<compile_context>
chip_gen: v7x
topology: tpu7x:2x2x1
jax: 0.10.0
libtpu: 0.0.40
codegen_flags: <defaults>
</compile_context>

<pallas_src>
import functools

import jax
import jax.numpy as jnp
from jax.experimental import pallas as pl
from jax.experimental.pallas import tpu as pltpu

INPUT_SIZE = 9
HIDDEN = 64
FC_DIM = 8
T_CHUNK_CAP = 32


def _round_up(n, m):
    return (n + m - 1) // m * m


def _cdiv(a, b):
    return (a + b - 1) // b


def _softplus(x):
    # numerically-stable softplus == F.softplus (threshold linearization is
    # fp32-equivalent for these magnitudes)
    return jnp.maximum(x, 0.0) + jnp.log1p(jnp.exp(-jnp.abs(x)))


def rnn_actor_kernel(sb_ref, x_ref, wih_ref, brnn_ref, whh_ref,
                     wfc_ref, bfc_ref, whead_ref, bhead_ref,
                     out_ref, h_ref, xw_ref,
                     *, seq_len, t_chunk, out_dim, mask_tail):
    c = pl.program_id(1)                      # time-chunk index (innermost)
    n_chunks = pl.num_programs(1)
    tb = h_ref.shape[1]                       # batch tile (lane dim)

    @pl.when(c == 0)
    def _():                                  # h_0 = 0 (nn.RNN default)
        h_ref[...] = jnp.zeros_like(h_ref)

    wih = wih_ref[...]                        # (64, 9)
    whh = whh_ref[...]                        # (64, 64)
    # hoisted lane-broadcast of (b_ih + b_hh); do NOT broadcast inside the loop
    bias_b = jnp.broadcast_to(brnn_ref[...], (HIDDEN, tb))

    # --- Phase 1: chunk input projection, off the serial chain --------------
    # Independent across t -> MXU pipelines/overlaps these freely; result goes
    # to a VMEM scratch so it is not held live in vregs across the recurrence.
    def proj(t, carry):
        xt = x_ref[t]                                          # (9, tb)
        xw_ref[t] = (jnp.dot(wih, xt, preferred_element_type=jnp.float32)
                     + bias_b)                                 # (64, tb)
        return carry
    jax.lax.fori_loop(0, t_chunk, proj, 0, unroll=True)

    # --- Phase 2: serial Elman recurrence: only W_hh @ h + tanh per step ----
    def step(t, h):
        hn = jnp.tanh(xw_ref[t]
                      + jnp.dot(whh, h, preferred_element_type=jnp.float32))
        if mask_tail:
            # padded time steps (beyond seq_len) must not update h
            hn = jnp.where(c * t_chunk + t < seq_len, hn, h)
        return hn
    h = jax.lax.fori_loop(0, t_chunk, step, h_ref[...], unroll=True)
    h_ref[...] = h                            # carry across chunks

    # --- Epilogue on the last chunk only -------------------------------------
    @pl.when(c == n_chunks - 1)
    def _():
        scale = sb_ref[0]                     # SMEM scalars (traced bounds ok)
        abias = sb_ref[1]
        feat = jnp.tanh(
            jnp.dot(wfc_ref[...], h_ref[...], preferred_element_type=jnp.float32)
            + jnp.broadcast_to(bfc_ref[...], (FC_DIM, tb)))            # (8, tb)
        head = (jnp.dot(whead_ref[...], feat, preferred_element_type=jnp.float32)
                + jnp.broadcast_to(bhead_ref[...], (2 * out_dim, tb)))  # (2o, tb)
        # Lane-dense fused write: mu rows [0, out_dim), sigma rows the rest.
        # TODO(synk): if out_dim grows, split rows and compute tanh/softplus
        #             only on their own halves instead of over all rows.
        row = jax.lax.broadcasted_iota(jnp.int32, head.shape, 0)
        mu = scale * jnp.tanh(head) - abias
        sigma = _softplus(head)
        out_ref[...] = jnp.where(row < out_dim, mu, sigma)


def rnn_actor_forward(x, params, action_low, action_high):
    """x: (B, 9, T) float32 (or (9, T); gets a batch dim like the torch module)."""
    if x.ndim == 2:
        x = x[None]
    batch, in_feat, seq_len = x.shape
    out_dim = params["w_mu"].shape[0]

    # (B, 9, T) -> (T, 9, B): time-major with batch on the lane axis.
    x = jnp.transpose(x, (2, 1, 0)).astype(jnp.float32)

    # scale / bias through SMEM so traced action bounds work under jit.
    scale = (jnp.asarray(action_high, jnp.float32)
             - jnp.asarray(action_low, jnp.float32)) / 2.0
    bias = scale - jnp.asarray(action_high, jnp.float32)
    scale_bias = jnp.stack([scale, bias]).astype(jnp.float32)          # (2,)

    # Weights passed untransposed: with column-per-batch layout the kernel does
    # W @ h directly (matches torch's h @ W^T). Biases fused / column vectors.
    w_ih = params["w_ih"].astype(jnp.float32)                          # (64, 9)
    w_hh = params["w_hh"].astype(jnp.float32)                          # (64, 64)
    w_fc = params["w_fc"].astype(jnp.float32)                          # (8, 64)
    w_head = jnp.concatenate(
        [params["w_mu"], params["w_sg"]], axis=0).astype(jnp.float32)  # (2*out, 8)
    b_rnn = (params["b_ih"] + params["b_hh"]).reshape(-1, 1).astype(jnp.float32)
    b_fc = params["b_fc"].reshape(-1, 1).astype(jnp.float32)
    b_head = jnp.concatenate(
        [params["b_mu"], params["b_sg"]]).reshape(-1, 1).astype(jnp.float32)

    # --- Batch tiling (lane axis) --------------------------------------------
    if batch <= 256:
        tile_b = _round_up(batch, 8)          # single tile; last dim == full dim
        b_pad = tile_b
    else:
        tile_b = 256                          # multiple of 128 -> valid lane tile
        b_pad = _round_up(batch, tile_b)
    n_btiles = b_pad // tile_b

    # --- Time chunking (bounded VMEM, pipelined x prefetch) ------------------
    n_chunks = _cdiv(seq_len, T_CHUNK_CAP)
    t_chunk = _cdiv(seq_len, n_chunks)        # balanced chunks, <= T_CHUNK_CAP
    t_pad = t_chunk * n_chunks
    mask_tail = (t_pad != seq_len)

    pad_b = b_pad - batch
    pad_t = t_pad - seq_len
    if pad_b or pad_t:
        x = jnp.pad(x, ((0, pad_t), (0, 0), (0, pad_b)))

    kernel = functools.partial(rnn_actor_kernel, seq_len=seq_len,
                               t_chunk=t_chunk, out_dim=out_dim,
                               mask_tail=mask_tail)

    def _full(shape):
        return pl.BlockSpec(shape, lambda i, c: (0,) * len(shape))

    fused = pl.pallas_call(
        kernel,
        out_shape=jax.ShapeDtypeStruct((2 * out_dim, b_pad), jnp.float32),
        grid=(n_btiles, n_chunks),
        in_specs=[
            pl.BlockSpec(memory_space=pltpu.MemorySpace.SMEM),      # scale/bias
            pl.BlockSpec((t_chunk, in_feat, tile_b), lambda i, c: (c, 0, i)),
            _full((HIDDEN, in_feat)),                               # W_ih
            _full((HIDDEN, 1)),                                     # b_ih + b_hh
            _full((HIDDEN, HIDDEN)),                                # W_hh
            _full((FC_DIM, HIDDEN)),                                # W_fc
            _full((FC_DIM, 1)),                                     # b_fc
            _full((2 * out_dim, FC_DIM)),                           # [W_mu; W_sg]
            _full((2 * out_dim, 1)),                                # [b_mu; b_sg]
        ],
        out_specs=pl.BlockSpec((2 * out_dim, tile_b), lambda i, c: (0, i)),
        scratch_shapes=[
            pltpu.VMEM((HIDDEN, tile_b), jnp.float32),              # h carry
            pltpu.VMEM((t_chunk, HIDDEN, tile_b), jnp.float32),     # xw chunk
        ],
        compiler_params=pltpu.CompilerParams(
            dimension_semantics=("parallel", "arbitrary")),
    )(scale_bias, x, w_ih, b_rnn, w_hh, w_fc, b_fc, w_head, b_head)

    mu = fused[:out_dim, :batch].T
    sigma = fused[out_dim:, :batch].T
    return mu, sigma


def init_params(key, out_dim):
    # Deterministic synthetic init (shapes match the torch module's __init__).
    # TODO(synk): torch orthogonal_ init for fc1/mu/sigma weights is not replicated;
    # plain scaled-normal init is used (forward semantics are unaffected).
    ks = jax.random.split(key, 10)
    s = 0.1
    return {
        "w_ih": s * jax.random.normal(ks[0], (HIDDEN, INPUT_SIZE), jnp.float32),
        "b_ih": s * jax.random.normal(ks[1], (HIDDEN,), jnp.float32),
        "w_hh": s * jax.random.normal(ks[2], (HIDDEN, HIDDEN), jnp.float32),
        "b_hh": s * jax.random.normal(ks[3], (HIDDEN,), jnp.float32),
        "w_fc": s * jax.random.normal(ks[4], (FC_DIM, HIDDEN), jnp.float32),
        "b_fc": s * jax.random.normal(ks[5], (FC_DIM,), jnp.float32),
        "w_mu": s * jax.random.normal(ks[6], (out_dim, FC_DIM), jnp.float32),
        "b_mu": s * jax.random.normal(ks[7], (out_dim,), jnp.float32),
        "w_sg": s * jax.random.normal(ks[8], (out_dim, FC_DIM), jnp.float32),
        "b_sg": s * jax.random.normal(ks[9], (out_dim,), jnp.float32),
    }


def _reference_forward(x, params, action_low, action_high):
    # Pure-JAX reference mirroring the torch forward, for a sanity check.
    if x.ndim == 2:
        x = x[None]
    x = jnp.transpose(x, (0, 2, 1))
    scale = (action_high - action_low) / 2.0
    bias = scale - action_high
    h = jnp.zeros((x.shape[0], HIDDEN), jnp.float32)
    for t in range(x.shape[1]):
        h = jnp.tanh(x[:, t, :] @ params["w_ih"].T + params["b_ih"]
                     + h @ params["w_hh"].T + params["b_hh"])
    feat = jnp.tanh(h @ params["w_fc"].T + params["b_fc"])
    mu = scale * jnp.tanh(feat @ params["w_mu"].T + params["b_mu"]) - bias
    sigma = jax.nn.softplus(feat @ params["w_sg"].T + params["b_sg"])
    return mu, sigma


if __name__ == "__main__":
    key = jax.random.PRNGKey(0)
    k_x, k_p = jax.random.split(key)

    batch, seq_len, out_dim = 2, 8, 2
    action_low, action_high = -2.0, 2.0

    # x in PyTorch layout (B, features=9, T)
    x = jax.random.normal(k_x, (batch, INPUT_SIZE, seq_len), jnp.float32)
    params = init_params(k_p, out_dim)

    mu, sigma = rnn_actor_forward(x, params, action_low, action_high)
    jax.block_until_ready((mu, sigma))

    mu_ref, sigma_ref = _reference_forward(x, params, action_low, action_high)
    assert jnp.allclose(mu, mu_ref, atol=1e-5), "mu mismatch vs reference"
    assert jnp.allclose(sigma, sigma_ref, atol=1e-5), "sigma mismatch vs reference"

    print("KERNEL_OK")
</pallas_src>

<mosaic_0001>
module attributes {stable_mosaic.version = 11 : i64} {
  func.func @rnn_actor_kernel(%arg0: i32, %arg1: i32, %arg2: memref<2xf32, #tpu.memory_space<smem>>, %arg3: memref<8x9x8xf32, #tpu.memory_space<vmem>>, %arg4: memref<64x9xf32, #tpu.memory_space<vmem>>, %arg5: memref<64x1xf32, #tpu.memory_space<vmem>>, %arg6: memref<64x64xf32, #tpu.memory_space<vmem>>, %arg7: memref<8x64xf32, #tpu.memory_space<vmem>>, %arg8: memref<8x1xf32, #tpu.memory_space<vmem>>, %arg9: memref<4x8xf32, #tpu.memory_space<vmem>>, %arg10: memref<4x1xf32, #tpu.memory_space<vmem>>, %arg11: memref<4x8xf32, #tpu.memory_space<vmem>>, %arg12: memref<64x8xf32, #tpu.memory_space<vmem>>, %arg13: memref<8x64x8xf32, #tpu.memory_space<vmem>>) attributes {dimension_semantics = [#tpu.dimension_semantics<parallel>, #tpu.dimension_semantics<arbitrary>], iteration_bounds = array<i64: 1, 1>, scalar_prefetch = 0 : i64, scratch_operands = 2 : i64, tpu.core_type = #tpu.core_type<tc>, window_params = [{transform_indices = @transform_0, window_bounds = array<i64: 2>}, {transform_indices = @transform_1, window_bounds = array<i64: 8, 9, 8>}, {pipeline_mode = #tpu.pipeline_mode<synchronous>, transform_indices = @transform_2, window_bounds = array<i64: 64, 9>}, {pipeline_mode = #tpu.pipeline_mode<synchronous>, transform_indices = @transform_3, window_bounds = array<i64: 64, 1>}, {pipeline_mode = #tpu.pipeline_mode<synchronous>, transform_indices = @transform_4, window_bounds = array<i64: 64, 64>}, {pipeline_mode = #tpu.pipeline_mode<synchronous>, transform_indices = @transform_5, window_bounds = array<i64: 8, 64>}, {pipeline_mode = #tpu.pipeline_mode<synchronous>, transform_indices = @transform_6, window_bounds = array<i64: 8, 1>}, {pipeline_mode = #tpu.pipeline_mode<synchronous>, transform_indices = @transform_7, window_bounds = array<i64: 4, 8>}, {pipeline_mode = #tpu.pipeline_mode<synchronous>, transform_indices = @transform_8, window_bounds = array<i64: 4, 1>}, {transform_indices = @transform_9, window_bounds = array<i64: 4, 8>}]} {
    %c0_i32 = arith.constant 0 : i32
    %0 = arith.cmpi eq, %arg1, %c0_i32 : i32
    %1 = arith.extui %0 : i1 to i32
    %c0_i32_0 = arith.constant 0 : i32
    %2 = arith.cmpi ne, %1, %c0_i32_0 : i32
    scf.if %2 {
      %cst_85 = arith.constant 0.000000e+00 : f32
      %133 = vector.broadcast %cst_85 : f32 to vector<64x8xf32>
      %c0_86 = arith.constant 0 : index
      %c0_87 = arith.constant 0 : index
      %134 = vector.load %arg12[%c0_86, %c0_87] : memref<64x8xf32, #tpu.memory_space<vmem>>, vector<64x8xf32>
      tpu.vector_store %arg12[%c0_86, %c0_87], %133 {strides = array<i32>} : memref<64x8xf32, #tpu.memory_space<vmem>>, vector<64x8xf32>,
    } else {
    }
    %c0 = arith.constant 0 : index
    %c0_1 = arith.constant 0 : index
    %3 = vector.load %arg4[%c0, %c0_1] : memref<64x9xf32, #tpu.memory_space<vmem>>, vector<64x9xf32>
    %c0_2 = arith.constant 0 : index
    %c0_3 = arith.constant 0 : index
    %4 = vector.load %arg6[%c0_2, %c0_3] : memref<64x64xf32, #tpu.memory_space<vmem>>, vector<64x64xf32>
    %c0_4 = arith.constant 0 : index
    %c0_5 = arith.constant 0 : index
    %5 = vector.load %arg5[%c0_4, %c0_5] : memref<64x1xf32, #tpu.memory_space<vmem>>, vector<64x1xf32>
    %6 = vector.shape_cast %5 : vector<64x1xf32> to vector<64x1xf32>
    %7 = vector.broadcast %6 : vector<64x1xf32> to vector<64x8xf32>
    %c0_i32_6 = arith.constant 0 : i32
    %8 = arith.index_cast %c0_i32_6 : i32 to index
    %c0_7 = arith.constant 0 : index
    %c0_8 = arith.constant 0 : index
    %9 = vector.load %arg3[%8, %c0_7, %c0_8] : memref<8x9x8xf32, #tpu.memory_space<vmem>>, vector<1x9x8xf32>
    %10 = vector.shape_cast %9 : vector<1x9x8xf32> to vector<9x8xf32>
    %cst = arith.constant dense<0.000000e+00> : vector<64x8xf32>
    %11 = tpu.matmul %3, %10, %cst {dimension_numbers = #tpu.dot_dimension_numbers<[1], [0], [0], [1], [0, 0, 1, 1], [], []>} : vector<64x9xf32>, vector<9x8xf32>, vector<64x8xf32> -> vector<64x8xf32>
    %12 = arith.addf %11, %7 : vector<64x8xf32>
    %13 = arith.index_cast %c0_i32_6 : i32 to index
    %c0_9 = arith.constant 0 : index
    %c0_10 = arith.constant 0 : index
    %14 = vector.load %arg13[%13, %c0_9, %c0_10] : memref<8x64x8xf32, #tpu.memory_space<vmem>>, vector<1x64x8xf32>
    %15 = vector.shape_cast %14 : vector<1x64x8xf32> to vector<64x8xf32>
    %16 = vector.shape_cast %12 : vector<64x8xf32> to vector<1x64x8xf32>
    tpu.vector_store %arg13[%13, %c0_9, %c0_10], %16 {strides = array<i32>} : memref<8x64x8xf32, #tpu.memory_space<vmem>>, vector<1x64x8xf32>,
    %c1_i32 = arith.constant 1 : i32
    %17 = arith.index_cast %c1_i32 : i32 to index
    %c0_11 = arith.constant 0 : index
    %c0_12 = arith.constant 0 : index
    %18 = vector.load %arg3[%17, %c0_11, %c0_12] : memref<8x9x8xf32, #tpu.memory_space<vmem>>, vector<1x9x8xf32>
    %19 = vector.shape_cast %18 : vector<1x9x8xf32> to vector<9x8xf32>
    %cst_13 = arith.constant dense<0.000000e+00> : vector<64x8xf32>
    %20 = tpu.matmul %3, %19, %cst_13 {dimension_numbers = #tpu.dot_dimension_numbers<[1], [0], [0], [1], [0, 0, 1, 1], [], []>} : vector<64x9xf32>, vector<9x8xf32>, vector<64x8xf32> -> vector<64x8xf32>
    %21 = arith.addf %20, %7 : vector<64x8xf32>
    %22 = arith.index_cast %c1_i32 : i32 to index
    %c0_14 = arith.constant 0 : index
    %c0_15 = arith.constant 0 : index
    %23 = vector.load %arg13[%22, %c0_14, %c0_15] : memref<8x64x8xf32, #tpu.memory_space<vmem>>, vector<1x64x8xf32>
    %24 = vector.shape_cast %23 : vector<1x64x8xf32> to vector<64x8xf32>
    %25 = vector.shape_cast %21 : vector<64x8xf32> to vector<1x64x8xf32>
    tpu.vector_store %arg13[%22, %c0_14, %c0_15], %25 {strides = array<i32>} : memref<8x64x8xf32, #tpu.memory_space<vmem>>, vector<1x64x8xf32>,
    %c2_i32 = arith.constant 2 : i32
    %26 = arith.index_cast %c2_i32 : i32 to index
    %c0_16 = arith.constant 0 : index
    %c0_17 = arith.constant 0 : index
    %27 = vector.load %arg3[%26, %c0_16, %c0_17] : memref<8x9x8xf32, #tpu.memory_space<vmem>>, vector<1x9x8xf32>
    %28 = vector.shape_cast %27 : vector<1x9x8xf32> to vector<9x8xf32>
    %cst_18 = arith.constant dense<0.000000e+00> : vector<64x8xf32>
    %29 = tpu.matmul %3, %28, %cst_18 {dimension_numbers = #tpu.dot_dimension_numbers<[1], [0], [0], [1], [0, 0, 1, 1], [], []>} : vector<64x9xf32>, vector<9x8xf32>, vector<64x8xf32> -> vector<64x8xf32>
    %30 = arith.addf %29, %7 : vector<64x8xf32>
    %31 = arith.index_cast %c2_i32 : i32 to index
    %c0_19 = arith.constant 0 : index
    %c0_20 = arith.constant 0 : index
    %32 = vector.load %arg13[%31, %c0_19, %c0_20] : memref<8x64x8xf32, #tpu.memory_space<vmem>>, vector<1x64x8xf32>
    %33 = vector.shape_cast %32 : vector<1x64x8xf32> to vector<64x8xf32>
    %34 = vector.shape_cast %30 : vector<64x8xf32> to vector<1x64x8xf32>
    tpu.vector_store %arg13[%31, %c0_19, %c0_20], %34 {strides = array<i32>} : memref<8x64x8xf32, #tpu.memory_space<vmem>>, vector<1x64x8xf32>,
    %c3_i32 = arith.constant 3 : i32
    %35 = arith.index_cast %c3_i32 : i32 to index
    %c0_21 = arith.constant 0 : index
    %c0_22 = arith.constant 0 : index
    %36 = vector.load %arg3[%35, %c0_21, %c0_22] : memref<8x9x8xf32, #tpu.memory_space<vmem>>, vector<1x9x8xf32>
    %37 = vector.shape_cast %36 : vector<1x9x8xf32> to vector<9x8xf32>
    %cst_23 = arith.constant dense<0.000000e+00> : vector<64x8xf32>
    %38 = tpu.matmul %3, %37, %cst_23 {dimension_numbers = #tpu.dot_dimension_numbers<[1], [0], [0], [1], [0, 0, 1, 1], [], []>} : vector<64x9xf32>, vector<9x8xf32>, vector<64x8xf32> -> vector<64x8xf32>
    %39 = arith.addf %38, %7 : vector<64x8xf32>
    %40 = arith.index_cast %c3_i32 : i32 to index
    %c0_24 = arith.constant 0 : index
    %c0_25 = arith.constant 0 : index
    %41 = vector.load %arg13[%40, %c0_24, %c0_25] : memref<8x64x8xf32, #tpu.memory_space<vmem>>, vector<1x64x8xf32>
    %42 = vector.shape_cast %41 : vector<1x64x8xf32> to vector<64x8xf32>
    %43 = vector.shape_cast %39 : vector<64x8xf32> to vector<1x64x8xf32>
    tpu.vector_store %arg13[%40, %c0_24, %c0_25], %43 {strides = array<i32>} : memref<8x64x8xf32, #tpu.memory_space<vmem>>, vector<1x64x8xf32>,
    %c4_i32 = arith.constant 4 : i32
    %44 = arith.index_cast %c4_i32 : i32 to index
    %c0_26 = arith.constant 0 : index
    %c0_27 = arith.constant 0 : index
    %45 = vector.load %arg3[%44, %c0_26, %c0_27] : memref<8x9x8xf32, #tpu.memory_space<vmem>>, vector<1x9x8xf32>
    %46 = vector.shape_cast %45 : vector<1x9x8xf32> to vector<9x8xf32>
    %cst_28 = arith.constant dense<0.000000e+00> : vector<64x8xf32>
    %47 = tpu.matmul %3, %46, %cst_28 {dimension_numbers = #tpu.dot_dimension_numbers<[1], [0], [0], [1], [0, 0, 1, 1], [], []>} : vector<64x9xf32>, vector<9x8xf32>, vector<64x8xf32> -> vector<64x8xf32>
    %48 = arith.addf %47, %7 : vector<64x8xf32>
    %49 = arith.index_cast %c4_i32 : i32 to index
    %c0_29 = arith.constant 0 : index
    %c0_30 = arith.constant 0 : index
    %50 = vector.load %arg13[%49, %c0_29, %c0_30] : memref<8x64x8xf32, #tpu.memory_space<vmem>>, vector<1x64x8xf32>
    %51 = vector.shape_cast %50 : vector<1x64x8xf32> to vector<64x8xf32>
    %52 = vector.shape_cast %48 : vector<64x8xf32> to vector<1x64x8xf32>
    tpu.vector_store %arg13[%49, %c0_29, %c0_30], %52 {strides = array<i32>} : memref<8x64x8xf32, #tpu.memory_space<vmem>>, vector<1x64x8xf32>,
    %c5_i32 = arith.constant 5 : i32
    %53 = arith.index_cast %c5_i32 : i32 to index
    %c0_31 = arith.constant 0 : index
    %c0_32 = arith.constant 0 : index
    %54 = vector.load %arg3[%53, %c0_31, %c0_32] : memref<8x9x8xf32, #tpu.memory_space<vmem>>, vector<1x9x8xf32>
    %55 = vector.shape_cast %54 : vector<1x9x8xf32> to vector<9x8xf32>
    %cst_33 = arith.constant dense<0.000000e+00> : vector<64x8xf32>
    %56 = tpu.matmul %3, %55, %cst_33 {dimension_numbers = #tpu.dot_dimension_numbers<[1], [0], [0], [1], [0, 0, 1, 1], [], []>} : vector<64x9xf32>, vector<9x8xf32>, vector<64x8xf32> -> vector<64x8xf32>
    %57 = arith.addf %56, %7 : vector<64x8xf32>
    %58 = arith.index_cast %c5_i32 : i32 to index
    %c0_34 = arith.constant 0 : index
    %c0_35 = arith.constant 0 : index
    %59 = vector.load %arg13[%58, %c0_34, %c0_35] : memref<8x64x8xf32, #tpu.memory_space<vmem>>, vector<1x64x8xf32>
    %60 = vector.shape_cast %59 : vector<1x64x8xf32> to vector<64x8xf32>
    %61 = vector.shape_cast %57 : vector<64x8xf32> to vector<1x64x8xf32>
    tpu.vector_store %arg13[%58, %c0_34, %c0_35], %61 {strides = array<i32>} : memref<8x64x8xf32, #tpu.memory_space<vmem>>, vector<1x64x8xf32>,
    %c6_i32 = arith.constant 6 : i32
    %62 = arith.index_cast %c6_i32 : i32 to index
    %c0_36 = arith.constant 0 : index
    %c0_37 = arith.constant 0 : index
    %63 = vector.load %arg3[%62, %c0_36, %c0_37] : memref<8x9x8xf32, #tpu.memory_space<vmem>>, vector<1x9x8xf32>
    %64 = vector.shape_cast %63 : vector<1x9x8xf32> to vector<9x8xf32>
    %cst_38 = arith.constant dense<0.000000e+00> : vector<64x8xf32>
    %65 = tpu.matmul %3, %64, %cst_38 {dimension_numbers = #tpu.dot_dimension_numbers<[1], [0], [0], [1], [0, 0, 1, 1], [], []>} : vector<64x9xf32>, vector<9x8xf32>, vector<64x8xf32> -> vector<64x8xf32>
    %66 = arith.addf %65, %7 : vector<64x8xf32>
    %67 = arith.index_cast %c6_i32 : i32 to index
    %c0_39 = arith.constant 0 : index
    %c0_40 = arith.constant 0 : index
    %68 = vector.load %arg13[%67, %c0_39, %c0_40] : memref<8x64x8xf32, #tpu.memory_space<vmem>>, vector<1x64x8xf32>
    %69 = vector.shape_cast %68 : vector<1x64x8xf32> to vector<64x8xf32>
    %70 = vector.shape_cast %66 : vector<64x8xf32> to vector<1x64x8xf32>
    tpu.vector_store %arg13[%67, %c0_39, %c0_40], %70 {strides = array<i32>} : memref<8x64x8xf32, #tpu.memory_space<vmem>>, vector<1x64x8xf32>,
    %c7_i32 = arith.constant 7 : i32
    %71 = arith.index_cast %c7_i32 : i32 to index
    %c0_41 = arith.constant 0 : index
    %c0_42 = arith.constant 0 : index
    %72 = vector.load %arg3[%71, %c0_41, %c0_42] : memref<8x9x8xf32, #tpu.memory_space<vmem>>, vector<1x9x8xf32>
    %73 = vector.shape_cast %72 : vector<1x9x8xf32> to vector<9x8xf32>
    %cst_43 = arith.constant dense<0.000000e+00> : vector<64x8xf32>
    %74 = tpu.matmul %3, %73, %cst_43 {dimension_numbers = #tpu.dot_dimension_numbers<[1], [0], [0], [1], [0, 0, 1, 1], [], []>} : vector<64x9xf32>, vector<9x8xf32>, vector<64x8xf32> -> vector<64x8xf32>
    %75 = arith.addf %74, %7 : vector<64x8xf32>
    %76 = arith.index_cast %c7_i32 : i32 to index
    %c0_44 = arith.constant 0 : index
    %c0_45 = arith.constant 0 : index
    %77 = vector.load %arg13[%76, %c0_44, %c0_45] : memref<8x64x8xf32, #tpu.memory_space<vmem>>, vector<1x64x8xf32>
    %78 = vector.shape_cast %77 : vector<1x64x8xf32> to vector<64x8xf32>
    %79 = vector.shape_cast %75 : vector<64x8xf32> to vector<1x64x8xf32>
    tpu.vector_store %arg13[%76, %c0_44, %c0_45], %79 {strides = array<i32>} : memref<8x64x8xf32, #tpu.memory_space<vmem>>, vector<1x64x8xf32>,
    %c8_i32 = arith.constant 8 : i32
    %c0_46 = arith.constant 0 : index
    %c0_47 = arith.constant 0 : index
    %80 = vector.load %arg12[%c0_46, %c0_47] : memref<64x8xf32, #tpu.memory_space<vmem>>, vector<64x8xf32>
    %c0_i32_48 = arith.constant 0 : i32
    %81 = arith.index_cast %c0_i32_48 : i32 to index
    %c0_49 = arith.constant 0 : index
    %c0_50 = arith.constant 0 : index
    %82 = vector.load %arg13[%81, %c0_49, %c0_50] : memref<8x64x8xf32, #tpu.memory_space<vmem>>, vector<1x64x8xf32>
    %83 = vector.shape_cast %82 : vector<1x64x8xf32> to vector<64x8xf32>
    %cst_51 = arith.constant dense<0.000000e+00> : vector<64x8xf32>
    %84 = tpu.matmul %4, %80, %cst_51 {dimension_numbers = #tpu.dot_dimension_numbers<[1], [0], [0], [1], [0, 0, 1, 1], [], []>} : vector<64x64xf32>, vector<64x8xf32>, vector<64x8xf32> -> vector<64x8xf32>
    %85 = arith.addf %83, %84 : vector<64x8xf32>
    %86 = math.tanh %85 : vector<64x8xf32>
    %c1_i32_52 = arith.constant 1 : i32
    %87 = arith.index_cast %c1_i32_52 : i32 to index
    %c0_53 = arith.constant 0 : index
    %c0_54 = arith.constant 0 : index
    %88 = vector.load %arg13[%87, %c0_53, %c0_54] : memref<8x64x8xf32, #tpu.memory_space<vmem>>, vector<1x64x8xf32>
    %89 = vector.shape_cast %88 : vector<1x64x8xf32> to vector<64x8xf32>
    %cst_55 = arith.constant dense<0.000000e+00> : vector<64x8xf32>
    %90 = tpu.matmul %4, %86, %cst_55 {dimension_numbers = #tpu.dot_dimension_numbers<[1], [0], [0], [1], [0, 0, 1, 1], [], []>} : vector<64x64xf32>, vector<64x8xf32>, vector<64x8xf32> -> vector<64x8xf32>
    %91 = arith.addf %89, %90 : vector<64x8xf32>
    %92 = math.tanh %91 : vector<64x8xf32>
    %c2_i32_56 = arith.constant 2 : i32
    %93 = arith.index_cast %c2_i32_56 : i32 to index
    %c0_57 = arith.constant 0 : index
    %c0_58 = arith.constant 0 : index
    %94 = vector.load %arg13[%93, %c0_57, %c0_58] : memref<8x64x8xf32, #tpu.memory_space<vmem>>, vector<1x64x8xf32>
    %95 = vector.shape_cast %94 : vector<1x64x8xf32> to vector<64x8xf32>
    %cst_59 = arith.constant dense<0.000000e+00> : vector<64x8xf32>
    %96 = tpu.matmul %4, %92, %cst_59 {dimension_numbers = #tpu.dot_dimension_numbers<[1], [0], [0], [1], [0, 0, 1, 1], [], []>} : vector<64x64xf32>, vector<64x8xf32>, vector<64x8xf32> -> vector<64x8xf32>
    %97 = arith.addf %95, %96 : vector<64x8xf32>
    %98 = math.tanh %97 : vector<64x8xf32>
    %c3_i32_60 = arith.constant 3 : i32
    %99 = arith.index_cast %c3_i32_60 : i32 to index
    %c0_61 = arith.constant 0 : index
    %c0_62 = arith.constant 0 : index
    %100 = vector.load %arg13[%99, %c0_61, %c0_62] : memref<8x64x8xf32, #tpu.memory_space<vmem>>, vector<1x64x8xf32>
    %101 = vector.shape_cast %100 : vector<1x64x8xf32> to vector<64x8xf32>
    %cst_63 = arith.constant dense<0.000000e+00> : vector<64x8xf32>
    %102 = tpu.matmul %4, %98, %cst_63 {dimension_numbers = #tpu.dot_dimension_numbers<[1], [0], [0], [1], [0, 0, 1, 1], [], []>} : vector<64x64xf32>, vector<64x8xf32>, vector<64x8xf32> -> vector<64x8xf32>
    %103 = arith.addf %101, %102 : vector<64x8xf32>
    %104 = math.tanh %103 : vector<64x8xf32>
    %c4_i32_64 = arith.constant 4 : i32
    %105 = arith.index_cast %c4_i32_64 : i32 to index
    %c0_65 = arith.constant 0 : index
    %c0_66 = arith.constant 0 : index
    %106 = vector.load %arg13[%105, %c0_65, %c0_66] : memref<8x64x8xf32, #tpu.memory_space<vmem>>, vector<1x64x8xf32>
    %107 = vector.shape_cast %106 : vector<1x64x8xf32> to vector<64x8xf32>
    %cst_67 = arith.constant dense<0.000000e+00> : vector<64x8xf32>
    %108 = tpu.matmul %4, %104, %cst_67 {dimension_numbers = #tpu.dot_dimension_numbers<[1], [0], [0], [1], [0, 0, 1, 1], [], []>} : vector<64x64xf32>, vector<64x8xf32>, vector<64x8xf32> -> vector<64x8xf32>
    %109 = arith.addf %107, %108 : vector<64x8xf32>
    %110 = math.tanh %109 : vector<64x8xf32>
    %c5_i32_68 = arith.constant 5 : i32
    %111 = arith.index_cast %c5_i32_68 : i32 to index
    %c0_69 = arith.constant 0 : index
    %c0_70 = arith.constant 0 : index
    %112 = vector.load %arg13[%111, %c0_69, %c0_70] : memref<8x64x8xf32, #tpu.memory_space<vmem>>, vector<1x64x8xf32>
    %113 = vector.shape_cast %112 : vector<1x64x8xf32> to vector<64x8xf32>
    %cst_71 = arith.constant dense<0.000000e+00> : vector<64x8xf32>
    %114 = tpu.matmul %4, %110, %cst_71 {dimension_numbers = #tpu.dot_dimension_numbers<[1], [0], [0], [1], [0, 0, 1, 1], [], []>} : vector<64x64xf32>, vector<64x8xf32>, vector<64x8xf32> -> vector<64x8xf32>
    %115 = arith.addf %113, %114 : vector<64x8xf32>
    %116 = math.tanh %115 : vector<64x8xf32>
    %c6_i32_72 = arith.constant 6 : i32
    %117 = arith.index_cast %c6_i32_72 : i32 to index
    %c0_73 = arith.constant 0 : index
    %c0_74 = arith.constant 0 : index
    %118 = vector.load %arg13[%117, %c0_73, %c0_74] : memref<8x64x8xf32, #tpu.memory_space<vmem>>, vector<1x64x8xf32>
    %119 = vector.shape_cast %118 : vector<1x64x8xf32> to vector<64x8xf32>
    %cst_75 = arith.constant dense<0.000000e+00> : vector<64x8xf32>
    %120 = tpu.matmul %4, %116, %cst_75 {dimension_numbers = #tpu.dot_dimension_numbers<[1], [0], [0], [1], [0, 0, 1, 1], [], []>} : vector<64x64xf32>, vector<64x8xf32>, vector<64x8xf32> -> vector<64x8xf32>
    %121 = arith.addf %119, %120 : vector<64x8xf32>
    %122 = math.tanh %121 : vector<64x8xf32>
    %c7_i32_76 = arith.constant 7 : i32
    %123 = arith.index_cast %c7_i32_76 : i32 to index
    %c0_77 = arith.constant 0 : index
    %c0_78 = arith.constant 0 : index
    %124 = vector.load %arg13[%123, %c0_77, %c0_78] : memref<8x64x8xf32, #tpu.memory_space<vmem>>, vector<1x64x8xf32>
    %125 = vector.shape_cast %124 : vector<1x64x8xf32> to vector<64x8xf32>
    %cst_79 = arith.constant dense<0.000000e+00> : vector<64x8xf32>
    %126 = tpu.matmul %4, %122, %cst_79 {dimension_numbers = #tpu.dot_dimension_numbers<[1], [0], [0], [1], [0, 0, 1, 1], [], []>} : vector<64x64xf32>, vector<64x8xf32>, vector<64x8xf32> -> vector<64x8xf32>
    %127 = arith.addf %125, %126 : vector<64x8xf32>
    %128 = math.tanh %127 : vector<64x8xf32>
    %c8_i32_80 = arith.constant 8 : i32
    %c0_81 = arith.constant 0 : index
    %c0_82 = arith.constant 0 : index
    %129 = vector.load %arg12[%c0_81, %c0_82] : memref<64x8xf32, #tpu.memory_space<vmem>>, vector<64x8xf32>
    tpu.vector_store %arg12[%c0_81, %c0_82], %128 {strides = array<i32>} : memref<64x8xf32, #tpu.memory_space<vmem>>, vector<64x8xf32>,
    %c0_i32_83 = arith.constant 0 : i32
    %130 = arith.cmpi eq, %arg1, %c0_i32_83 : i32
    %131 = arith.extui %130 : i1 to i32
    %c0_i32_84 = arith.constant 0 : i32
    %132 = arith.cmpi ne, %131, %c0_i32_84 : i32
    scf.if %132 {
      %c0_85 = arith.constant 0 : index
      %133 = memref.load %arg2[%c0_85] : memref<2xf32, #tpu.memory_space<smem>>
      %c1 = arith.constant 1 : index
      %134 = memref.load %arg2[%c1] : memref<2xf32, #tpu.memory_space<smem>>
      %c0_86 = arith.constant 0 : index
      %c0_87 = arith.constant 0 : index
      %135 = vector.load %arg7[%c0_86, %c0_87] : memref<8x64xf32, #tpu.memory_space<vmem>>, vector<8x64xf32>
      %c0_88 = arith.constant 0 : index
      %c0_89 = arith.constant 0 : index
      %136 = vector.load %arg12[%c0_88, %c0_89] : memref<64x8xf32, #tpu.memory_space<vmem>>, vector<64x8xf32>
      %cst_90 = arith.constant dense<0.000000e+00> : vector<8x8xf32>
      %137 = tpu.matmul %135, %136, %cst_90 {dimension_numbers = #tpu.dot_dimension_numbers<[1], [0], [0], [1], [0, 0, 1, 1], [], []>} : vector<8x64xf32>, vector<64x8xf32>, vector<8x8xf32> -> vector<8x8xf32>
      %c0_91 = arith.constant 0 : index
      %c0_92 = arith.constant 0 : index
      %138 = vector.load %arg8[%c0_91, %c0_92] : memref<8x1xf32, #tpu.memory_space<vmem>>, vector<8x1xf32>
      %139 = vector.shape_cast %138 : vector<8x1xf32> to vector<8x1xf32>
      %140 = vector.broadcast %139 : vector<8x1xf32> to vector<8x8xf32>
      %141 = arith.addf %137, %140 : vector<8x8xf32>
      %142 = math.tanh %141 : vector<8x8xf32>
      %c0_93 = arith.constant 0 : index
      %c0_94 = arith.constant 0 : index
      %143 = vector.load %arg9[%c0_93, %c0_94] : memref<4x8xf32, #tpu.memory_space<vmem>>, vector<4x8xf32>
      %cst_95 = arith.constant dense<0.000000e+00> : vector<4x8xf32>
      %144 = tpu.matmul %143, %142, %cst_95 {dimension_numbers = #tpu.dot_dimension_numbers<[1], [0], [0], [1], [0, 0, 1, 1], [], []>} : vector<4x8xf32>, vector<8x8xf32>, vector<4x8xf32> -> vector<4x8xf32>
      %c0_96 = arith.constant 0 : index
      %c0_97 = arith.constant 0 : index
      %145 = vector.load %arg10[%c0_96, %c0_97] : memref<4x1xf32, #tpu.memory_space<vmem>>, vector<4x1xf32>
      %146 = vector.shape_cast %145 : vector<4x1xf32> to vector<4x1xf32>
      %147 = vector.broadcast %146 : vector<4x1xf32> to vector<4x8xf32>
      %148 = arith.addf %144, %147 : vector<4x8xf32>
      %149 = tpu.iota {dimensions = array<i32: 0>} : vector<4x8xi32>
      %150 = math.tanh %148 : vector<4x8xf32>
      %151 = vector.broadcast %133 : f32 to vector<4x8xf32>
      %152 = arith.mulf %151, %150 : vector<4x8xf32>
      %153 = vector.broadcast %134 : f32 to vector<4x8xf32>
      %154 = arith.subf %152, %153 : vector<4x8xf32>
      %cst_98 = arith.constant 0.000000e+00 : f32
      %155 = vector.broadcast %cst_98 : f32 to vector<4x8xf32>
      %156 = arith.maximumf %148, %155 : vector<4x8xf32>
      %157 = math.absf %148 : vector<4x8xf32>
      %cst_99 = arith.constant 0.000000e+00 : f32
      %158 = vector.broadcast %cst_99 : f32 to vector<4x8xf32>
      %159 = arith.subf %158, %157 : vector<4x8xf32>
      %160 = math.exp %159 : vector<4x8xf32>
      %161 = math.log1p %160 : vector<4x8xf32>
      %162 = arith.addf %156, %161 : vector<4x8xf32>
      %c2_i32_100 = arith.constant 2 : i32
      %163 = vector.broadcast %c2_i32_100 : i32 to vector<4x8xi32>
      %164 = arith.cmpi slt, %149, %163 : vector<4x8xi32>
      %165 = arith.select %164, %154, %162 : vector<4x8xi1>, vector<4x8xf32>
      %c0_101 = arith.constant 0 : index
      %c0_102 = arith.constant 0 : index
      %166 = vector.load %arg11[%c0_101, %c0_102] : memref<4x8xf32, #tpu.memory_space<vmem>>, vector<4x8xf32>
      tpu.vector_store %arg11[%c0_101, %c0_102], %165 {strides = array<i32>} : memref<4x8xf32, #tpu.memory_space<vmem>>, vector<4x8xf32>,
    } else {
    }
    return
  }
  func.func @transform_0(%arg0: i32, %arg1: i32) -> i32 {
    %c0_i32 = arith.constant 0 : i32
    %c0_i32_0 = arith.constant 0 : i32
    return %c0_i32 : i32
  }
  func.func @transform_1(%arg0: i32, %arg1: i32) -> (i32, i32, i32) {
    %c0_i32 = arith.constant 0 : i32
    %c0_i32_0 = arith.constant 0 : i32
    return %arg1, %c0_i32, %arg0 : i32, i32, i32
  }
  func.func @transform_2(%arg0: i32, %arg1: i32) -> (i32, i32) {
    %c0_i32 = arith.constant 0 : i32
    %c0_i32_0 = arith.constant 0 : i32
    %c0_i32_1 = arith.constant 0 : i32
    return %c0_i32, %c0_i32_0 : i32, i32
  }
  func.func @transform_3(%arg0: i32, %arg1: i32) -> (i32, i32) {
    %c0_i32 = arith.constant 0 : i32
    %c0_i32_0 = arith.constant 0 : i32
    %c0_i32_1 = arith.constant 0 : i32
    return %c0_i32, %c0_i32_0 : i32, i32
  }
  func.func @transform_4(%arg0: i32, %arg1: i32) -> (i32, i32) {
    %c0_i32 = arith.constant 0 : i32
    %c0_i32_0 = arith.constant 0 : i32
    %c0_i32_1 = arith.constant 0 : i32
    return %c0_i32, %c0_i32_0 : i32, i32
  }
  func.func @transform_5(%arg0: i32, %arg1: i32) -> (i32, i32) {
    %c0_i32 = arith.constant 0 : i32
    %c0_i32_0 = arith.constant 0 : i32
    %c0_i32_1 = arith.constant 0 : i32
    return %c0_i32, %c0_i32_0 : i32, i32
  }
  func.func @transform_6(%arg0: i32, %arg1: i32) -> (i32, i32) {
    %c0_i32 = arith.constant 0 : i32
    %c0_i32_0 = arith.constant 0 : i32
    %c0_i32_1 = arith.constant 0 : i32
    return %c0_i32, %c0_i32_0 : i32, i32
  }
  func.func @transform_7(%arg0: i32, %arg1: i32) -> (i32, i32) {
    %c0_i32 = arith.constant 0 : i32
    %c0_i32_0 = arith.constant 0 : i32
    %c0_i32_1 = arith.constant 0 : i32
    return %c0_i32, %c0_i32_0 : i32, i32
  }
  func.func @transform_8(%arg0: i32, %arg1: i32) -> (i32, i32) {
    %c0_i32 = arith.constant 0 : i32
    %c0_i32_0 = arith.constant 0 : i32
    %c0_i32_1 = arith.constant 0 : i32
    return %c0_i32, %c0_i32_0 : i32, i32
  }
  func.func @transform_9(%arg0: i32, %arg1: i32) -> (i32, i32) {
    %c0_i32 = arith.constant 0 : i32
    %c0_i32_0 = arith.constant 0 : i32
    return %c0_i32, %arg0 : i32, i32
  }
}

</mosaic_0001>

<bundles_post_ra>
// kernel: tpu_custom_call.1
= control target key start
LH: loop header
LB: loop body
LE: loop exit
PB: predicated region body
PF: predicated region fallthrough
CT: control target
= control target key end

     0   :  { %14 = vsyncpa [#allocation6], 0  ;;  %s4257_s0 = inlined_call_operand.vmem [shape: f32[2], index: 0, kind: input, shape index: {}]   ;;  %s4258_s1 = inlined_call_operand.vmem [shape: f32[8,9,8], index: 1, kind: input, shape index: {}]   ;;  %s4259_s2 = inlined_call_operand.vmem [shape: f32[64,9], index: 2, kind: input, shape index: {}]   ;;  %s4260_s3 = inlined_call_operand.vmem [shape: f32[64,1], index: 3, kind: input, shape index: {}]   ;;  %s4261_s4 = inlined_call_operand.vmem [shape: f32[64,64], index: 4, kind: input, shape index: {}]   ;;  %s4262_s5 = inlined_call_operand.vmem [shape: f32[8,64], index: 5, kind: input, shape index: {}]   ;;  %s4263_s6 = inlined_call_operand.vmem [shape: f32[8,1], index: 6, kind: input, shape index: {}]   ;;  %s4264_s7 = inlined_call_operand.vmem [shape: f32[4,8], index: 7, kind: input, shape index: {}]   ;;  %s4265_s8 = inlined_call_operand.vmem [shape: f32[4,1], index: 8, kind: input, shape index: {}]   ;;  %s4266_s9 = inlined_call_operand.hbm [shape: f32[4,8], index: 9, kind: output, shape index: {}]  }
   0x1   :  { %15 = vsyncpa [#allocation5], 0  ;;  %s22_s11 = sshll.u32 %s4257_s0, 4  ;;  %s23_s11 = int_to_ptr.vmem [resolvable:$true] %s22_s11 }
   0x2   :  { %s3485_s12 = scalar_lea.vmem %s23_s11, 16  ;;  %p3490_p1 = scmp.lt.s32.totalorder %s23_s11, %s23_s11 }
   0x3   :  { %p3486_p0 = scmp.ne.s32.totalorder %s23_s11, %s3485_s12  ;;  %p3491_p2 = scmp.lt.s32.totalorder %s3485_s12, %s3485_s12 }
   0x5   :  { %p3492_p3 = por %p3491_p2, %p3490_p1 }
   0x7   :  { %p3493_p4 = pnand %p3492_p3, %p3486_p0 }
   0x9   :  { %3496 = shalt.err (!%p3493_p4)
}
   0xa   :  { %s3523_s13 = smov [#allocation4]  }
   0xb   :  { %25 = dma.vmem_to_smem %s23_s11, 16, %s3523_s13, [#allocation6]  }
   0xc   :  { %3519 = dma.done.wait [#allocation6], 16  }
   0xd   :  { %3520 = vsyncadd [#allocation6], 4294967280 }
   0xe   :  { %45 = sfence }
   0xf   :  { %v123_v0 = vld [vmem:[%s4258_s1] sm:$0xff]  ;;  %v124_v1 = vld [vmem:[%s4258_s1 + $0x8] sm:$0x1]  ;;  %vm150_vm0 = vcmask 1040384   ;;  %v2405_v2 = vld [vmem:[%s4258_s1 + $0x10] sm:$0xff]  ;;  %vm3524_vm1 = vmmov 1  }
  0x10   :  { %v3144_v3 = vpack.c.bf16 %v124_v1, %v123_v0  ;;  %vm3592_vm2 = vmpackc.low %vm150_vm0, %vm3524_vm1  ;;  %v2406_v5 = vld [vmem:[%s4258_s1 + $0x18] sm:$0x1]  ;;  %v3602_v6 = vld [vmem:[%s4259_s2] sm:$0xff]  ;;  %vm125_vm3 = vcmask 72704   ;;  %vm50_vm4 = vcmask 64512   ;;  %v3525_v8 = vmov 0.0  }
  0x11   :  { %v3150_v7 = vpack.c.bf16 %v2406_v5, %v2405_v2  ;;  %2772 = vmatprep.mubr.msk.f32.mxu0 %vm125_vm3, %v3602_v6  ;;  %2788 = vmatprep.mubr.msk.f32.mxu1 %vm125_vm3, %v3602_v6  ;;  %51 = vst.msk [vmem:[#allocation2] sm:$0xff] %vm50_vm4, %v3525_v8  ;;  %52 = vst.msk [vmem:[#allocation2 + $0x8] sm:$0xff] %vm50_vm4, %v3525_v8  ;;  %v3629_v9 = vld [vmem:[%s4259_s2 + $0x8] sm:$0xff]  ;;  %v3526_v10 = vmov 0   ;;  %v3638_v11 = vld [vmem:[%s4259_s2 + $0x10] sm:$0xff]  ;;  %vm1124_vm5 = vcmask 523264  }
  0x12   :  { %53 = vst.msk [vmem:[#allocation2 + $0x10] sm:$0xff] %vm50_vm4, %v3525_v8  ;;  %54 = vst.msk [vmem:[#allocation2 + $0x18] sm:$0xff] %vm50_vm4, %v3525_v8  ;;  %3146 = vmatprep.subr.msk.bf16.mxu0 %vm3592_vm2, %v3144_v3  ;;  %3339 = vset.pattern.permute.xlu0 %v3526_v10  ;;  %v2416_v12 = vld [vmem:[%s4258_s1 + $0x20] sm:$0xff]  ;;  %v2417_v13 = vld [vmem:[%s4258_s1 + $0x28] sm:$0x1]  ;;  %vm3528_vm6 = vmmov 0  }
  0x13   :  { %55 = vst.msk [vmem:[#allocation2 + $0x20] sm:$0xff] %vm50_vm4, %v3525_v8  ;;  %56 = vst.msk [vmem:[#allocation2 + $0x28] sm:$0xff] %vm50_vm4, %v3525_v8  ;;  %3152 = vmatprep.subr.msk.bf16.mxu1 %vm3592_vm2, %v3150_v7  ;;  %3149 = vmatpush3.bf16.msk.msra.mxu0 %vm3592_vm2, %v3144_v3  ;;  %v3156_v14 = vpack.c.bf16 %v2417_v13, %v2416_v12  ;;  %v2427_v15 = vld [vmem:[%s4258_s1 + $0x30] sm:$0xff]  ;;  %v2428_v16 = vld [vmem:[%s4258_s1 + $0x38] sm:$0x1]  ;;  %s2546_s18 = sld [smem:[#allocation4 + $0x1]] }
  0x14   :  { %57 = vst.msk [vmem:[#allocation2 + $0x30] sm:$0xff] %vm50_vm4, %v3525_v8  ;;  %58 = vst.msk [vmem:[#allocation2 + $0x38] sm:$0xff] %vm50_vm4, %v3525_v8  ;;  %3155 = vmatpush3.bf16.msk.msra.mxu1 %vm3592_vm2, %v3150_v7  ;;  %v2438_v17 = vld [vmem:[%s4258_s1 + $0x40] sm:$0xff]  ;;  %3340 = vset.pattern.permute.xlu1 %v3526_v10  ;;  %v3162_v18 = vpack.c.bf16 %v2428_v16, %v2427_v15  ;;  %v2439_v19 = vld [vmem:[%s4258_s1 + $0x48] sm:$0x1]  ;;  %vm2379_vm9 = vcmask 60416  }
  0x15   :  { %v2449_v20 = vld [vmem:[%s4258_s1 + $0x50] sm:$0xff]  ;;  %v2450_v21 = vld [vmem:[%s4258_s1 + $0x58] sm:$0x1]  ;;  %3158 = vmatprep.subr.msk.bf16.mxu0 %vm3592_vm2, %v3156_v14  ;;  %v3168_v22 = vpack.c.bf16 %v2439_v19, %v2438_v17  ;;  %v3684_v24 = vld [vmem:[%s4259_s2 + $0x20] sm:$0xff] }
  0x16   :  { %2773 = vmatmul.mubr.msk.f32.vlgmr.msra.gmra.mrb[0].mxu0 %vm125_vm3, %v3629_v9  ;;  %v3677_v23 = vld [vmem:[%s4259_s2 + $0x18] sm:$0xff]  ;;  %3164 = vmatprep.subr.msk.bf16.mxu1 %vm3592_vm2, %v3162_v18  ;;  %v3174_v25 = vpack.c.bf16 %v2450_v21, %v2449_v20  ;;  %v3703_v26 = vld [vmem:[%s4259_s2 + $0x28] sm:$0xff]  ;;  %v3710_v27 = vld [vmem:[%s4259_s2 + $0x30] sm:$0xff] }
  0x17   :  { %2789 = vmatmul.mubr.msk.f32.vlgmr.msra.gmra.mrb[0].mxu1 %vm125_vm3, %v3629_v9  ;;  %2775 = vmatprep.mubr.msk.f32.mxu0 %vm125_vm3, %v3638_v11  ;;  %v75_v28 = vld [vmem:[%s4260_s3] sm:$0xff]  ;;  %v77_v29 = vld [vmem:[%s4260_s3 + $0x10] sm:$0xff]  ;;  %v76_v30 = vld [vmem:[%s4260_s3 + $0x8] sm:$0xff] }
  0x18   :  { %2791 = vmatprep.mubr.msk.f32.mxu1 %vm125_vm3, %v3638_v11  ;;  %3161 = vmatpush3.bf16.msk.msra.mxu0 %vm3592_vm2, %v3156_v14  ;;  %v3732_v31 = vld [vmem:[%s4259_s2 + $0x38] sm:$0xff]  ;;  %v2460_v33 = vld [vmem:[%s4258_s1 + $0x60] sm:$0xff]  ;;  %v2461_v34 = vld [vmem:[%s4258_s1 + $0x68] sm:$0x1] }
  0x19   :  { %3167 = vmatpush3.bf16.msk.msra.mxu1 %vm3592_vm2, %v3162_v18  ;;  %3170 = vmatprep.subr.msk.bf16.mxu0 %vm3592_vm2, %v3168_v22  ;;  %v78_v32 = vld [vmem:[%s4260_s3 + $0x18] sm:$0xff]  ;;  %v79_v35 = vld [vmem:[%s4260_s3 + $0x20] sm:$0xff]  ;;  %v2471_v36 = vld [vmem:[%s4258_s1 + $0x70] sm:$0xff]  ;;  %v3180_v39 = vpack.c.bf16 %v2461_v34, %v2460_v33 }
  0x1a   :  { %2776 = vmatmul.mubr.msk.f32.gmra.mrb[2].mxu0 %vm125_vm3, %v3677_v23  ;;  %3176 = vmatprep.subr.msk.bf16.mxu1 %vm3592_vm2, %v3174_v25  ;;  %v2472_v37 = vld [vmem:[%s4258_s1 + $0x78] sm:$0x1]  ;;  %v80_v38 = vld [vmem:[%s4260_s3 + $0x28] sm:$0xff]  ;;  %v81_v42 = vld [vmem:[%s4260_s3 + $0x30] sm:$0xff] }
  0x1b   :  { %2792 = vmatmul.mubr.msk.f32.gmra.mrb[2].mxu1 %vm125_vm3, %v3677_v23  ;;  %2778 = vmatprep.mubr.msk.f32.mxu0 %vm125_vm3, %v3684_v24  ;;  %v3186_v40 = vpack.c.bf16 %v2472_v37, %v2471_v36  ;;  %v82_v41 = vld [vmem:[%s4260_s3 + $0x38] sm:$0xff]  ;;  %v2276_v43 = vld [vmem:[%s4265_s8] sm:$0xf]  ;;  %v1109_v46 = vld [vmem:[#allocation2 + $0x8] sm:$0xff] }
  0x1c   :  { %2794 = vmatprep.mubr.msk.f32.mxu1 %vm125_vm3, %v3684_v24  ;;  %85 = vperm.xlu0 %3339, %v75_v28   ;;  %v2195_v44 = vld [vmem:[%s4263_s6] sm:$0xff]  ;;  %v1110_v48 = vld [vmem:[#allocation2 + $0x10] sm:$0xff]  ;;  %v1111_v49 = vld [vmem:[#allocation2 + $0x18] sm:$0xff] }
  0x1d   :  { %95 = vperm.xlu1 %3340, %v77_v29   ;;  %v1108_v45 = vld [vmem:[#allocation2] sm:$0xff]  ;;  %v3196_v50 = vpack.c.bf16 %v1111_v49, %v1110_v48  ;;  %v1113_v52 = vld [vmem:[#allocation2 + $0x28] sm:$0xff]  ;;  %v1114_v54 = vld [vmem:[#allocation2 + $0x30] sm:$0xff] }
  0x1e   :  { %2779 = vmatmul.mubr.msk.f32.gmra.mrb[4].mxu0 %vm125_vm3, %v3703_v26  ;;  %v3192_v47 = vpack.c.bf16 %v1109_v46, %v1108_v45  ;;  %v1112_v51 = vld [vmem:[#allocation2 + $0x20] sm:$0xff]  ;;  %v1115_v55 = vld [vmem:[#allocation2 + $0x38] sm:$0xff]  ;;  %v3889_v58 = vld [vmem:[%s4261_s4 + $0x8] sm:$0xff] }
  0x1f   :  { %2795 = vmatmul.mubr.msk.f32.gmra.mrb[4].mxu1 %vm125_vm3, %v3703_v26  ;;  %2781 = vmatprep.mubr.msk.f32.mxu0 %vm125_vm3, %v3710_v27  ;;  %v3200_v53 = vpack.c.bf16 %v1113_v52, %v1112_v51  ;;  %v3204_v56 = vpack.c.bf16 %v1115_v55, %v1114_v54  ;;  %v3880_v57 = vld [vmem:[%s4261_s4] sm:$0xff]  ;;  %v3896_v59 = vld [vmem:[%s4261_s4 + $0x10] sm:$0xff]  ;;  %v3907_v60 = vld [vmem:[%s4261_s4 + $0x18] sm:$0xff] }
  0x20   :  { %2797 = vmatprep.mubr.msk.f32.mxu1 %vm125_vm3, %v3710_v27  ;;  %90 = vperm.xlu0 %3339, %v76_v30   ;;  %v3912_v61 = vld [vmem:[%s4261_s4 + $0x20] sm:$0xff]  ;;  %v3921_v62 = vld [vmem:[%s4261_s4 + $0x28] sm:$0xff]  ;;  %v3926_v63 = vld [vmem:[%s4261_s4 + $0x30] sm:$0xff] }
  0x21   :  { %100 = vperm.xlu1 %3340, %v78_v32   ;;  %v3935_v0 = vld [vmem:[%s4261_s4 + $0x38] sm:$0xff] }
  0x22   :  { %2782 = vmatmul.mubr.msk.f32.gmra.mrb[6].mxu0 %vm125_vm3, %v3732_v31 }
  0x23   :  { %2798 = vmatmul.mubr.msk.f32.gmra.mrb[6].mxu1 %vm125_vm3, %v3732_v31  ;;  %2804 = vmatprep.mubr.msk.f32.mxu0 %vm125_vm3, %v3602_v6 }
  0x24   :  { %2820 = vmatprep.mubr.msk.f32.mxu1 %vm125_vm3, %v3602_v6  ;;  %105 = vperm.xlu0 %3339, %v79_v35  }
  0x25   :  { %110 = vperm.xlu1 %3340, %v80_v38  }
  0x26   :  { %2805 = vmatmul.mubr.msk.f32.vlgmr.msra.gmra.mrb[8].mxu0 %vm125_vm3, %v3629_v9 }
  0x27   :  { %2821 = vmatmul.mubr.msk.f32.vlgmr.msra.gmra.mrb[8].mxu1 %vm125_vm3, %v3629_v9  ;;  %2807 = vmatprep.mubr.msk.f32.mxu0 %vm125_vm3, %v3638_v11 }
  0x28   :  { %2823 = vmatprep.mubr.msk.f32.mxu1 %vm125_vm3, %v3638_v11  ;;  %3173 = vmatpush3.bf16.msk.msra.mxu0 %vm3592_vm2, %v3168_v22 }
  0x29   :  { %3179 = vmatpush3.bf16.msk.msra.mxu1 %vm3592_vm2, %v3174_v25  ;;  %3182 = vmatprep.subr.msk.bf16.mxu0 %vm3592_vm2, %v3180_v39 }
  0x2a   :  { %2808 = vmatmul.mubr.msk.f32.gmra.mrb[10].mxu0 %vm125_vm3, %v3677_v23  ;;  %3188 = vmatprep.subr.msk.bf16.mxu1 %vm3592_vm2, %v3186_v40 }
  0x2b   :  { %2824 = vmatmul.mubr.msk.f32.gmra.mrb[10].mxu1 %vm125_vm3, %v3677_v23  ;;  %2810 = vmatprep.mubr.msk.f32.mxu0 %vm125_vm3, %v3684_v24 }
  0x2c   :  { %2826 = vmatprep.mubr.msk.f32.mxu1 %vm125_vm3, %v3684_v24  ;;  %120 = vperm.xlu1 %3340, %v82_v41  }
  0x2d   :  { %115 = vperm.xlu0 %3339, %v81_v42  }
  0x2e   :  { %2811 = vmatmul.mubr.msk.f32.gmra.mrb[12].mxu0 %vm125_vm3, %v3703_v26 }
  0x2f   :  { %2827 = vmatmul.mubr.msk.f32.gmra.mrb[12].mxu1 %vm125_vm3, %v3703_v26  ;;  %2813 = vmatprep.mubr.msk.f32.mxu0 %vm125_vm3, %v3710_v27 }
  0x30   :  { %2829 = vmatprep.mubr.msk.f32.mxu1 %vm125_vm3, %v3710_v27  ;;  %2279 = vperm.xlu1 %3340, %v2276_v43  }
  0x31   :  { %2198 = vperm.xlu0 %3339, %v2195_v44  }
  0x32   :  { %2814 = vmatmul.mubr.msk.f32.gmra.mrb[14].mxu0 %vm125_vm3, %v3732_v31 }
  0x33   :  { %2830 = vmatmul.mubr.msk.f32.gmra.mrb[14].mxu1 %vm125_vm3, %v3732_v31  ;;  %2836 = vmatprep.mubr.msk.f32.mxu0 %vm125_vm3, %v3602_v6 }
  0x34   :  { %2852 = vmatprep.mubr.msk.f32.mxu1 %vm125_vm3, %v3602_v6 }
  0x36   :  { %2837 = vmatmul.mubr.msk.f32.vlgmr.msra.gmra.mrb[16].mxu0 %vm125_vm3, %v3629_v9 }
  0x37   :  { %2853 = vmatmul.mubr.msk.f32.vlgmr.msra.gmra.mrb[16].mxu1 %vm125_vm3, %v3629_v9  ;;  %2839 = vmatprep.mubr.msk.f32.mxu0 %vm125_vm3, %v3638_v11 }
  0x38   :  { %2855 = vmatprep.mubr.msk.f32.mxu1 %vm125_vm3, %v3638_v11  ;;  %3185 = vmatpush3.bf16.msk.msra.mxu0 %vm3592_vm2, %v3180_v39 }
  0x39   :  { %3191 = vmatpush3.bf16.msk.msra.mxu1 %vm3592_vm2, %v3186_v40  ;;  %3193 = vmatprep.subr.bf16.mxu0 %v3192_v47 }
  0x3a   :  { %2840 = vmatmul.mubr.msk.f32.gmra.mrb[18].mxu0 %vm125_vm3, %v3677_v23 }
  0x3b   :  { %2856 = vmatmul.mubr.msk.f32.gmra.mrb[18].mxu1 %vm125_vm3, %v3677_v23  ;;  %2842 = vmatprep.mubr.msk.f32.mxu0 %vm125_vm3, %v3684_v24 }
  0x3c   :  { %2858 = vmatprep.mubr.msk.f32.mxu1 %vm125_vm3, %v3684_v24 }
  0x3e   :  { %2843 = vmatmul.mubr.msk.f32.gmra.mrb[20].mxu0 %vm125_vm3, %v3703_v26 }
  0x3f   :  { %2859 = vmatmul.mubr.msk.f32.gmra.mrb[20].mxu1 %vm125_vm3, %v3703_v26  ;;  %2845 = vmatprep.mubr.msk.f32.mxu0 %vm125_vm3, %v3710_v27 }
  0x40   :  { %2861 = vmatprep.mubr.msk.f32.mxu1 %vm125_vm3, %v3710_v27 }
  0x42   :  { %2846 = vmatmul.mubr.msk.f32.gmra.mrb[22].mxu0 %vm125_vm3, %v3732_v31 }
  0x43   :  { %2862 = vmatmul.mubr.msk.f32.gmra.mrb[22].mxu1 %vm125_vm3, %v3732_v31  ;;  %2868 = vmatprep.mubr.msk.f32.mxu0 %vm125_vm3, %v3602_v6 }
  0x44   :  { %2884 = vmatprep.mubr.msk.f32.mxu1 %vm125_vm3, %v3602_v6 }
  0x46   :  { %2869 = vmatmul.mubr.msk.f32.vlgmr.msra.gmra.mrb[24].mxu0 %vm125_vm3, %v3629_v9 }
  0x47   :  { %2885 = vmatmul.mubr.msk.f32.vlgmr.msra.gmra.mrb[24].mxu1 %vm125_vm3, %v3629_v9  ;;  %3195 = vmatpush3.bf16.msra.mxu0 %v3192_v47 }
  0x48   :  { %2871 = vmatprep.mubr.msk.f32.mxu0 %vm125_vm3, %v3638_v11  ;;  %2887 = vmatprep.mubr.msk.f32.mxu1 %vm125_vm3, %v3638_v11 }
  0x49   :  { %3197 = vmatprep.subr.bf16.mxu0 %v3196_v50 }
  0x4a   :  { %2872 = vmatmul.mubr.msk.f32.gmra.mrb[26].mxu0 %vm125_vm3, %v3677_v23 }
  0x4b   :  { %2888 = vmatmul.mubr.msk.f32.gmra.mrb[26].mxu1 %vm125_vm3, %v3677_v23  ;;  %3199 = vmatpush3.bf16.msra.mxu0 %v3196_v50 }
  0x4c   :  { %2874 = vmatprep.mubr.msk.f32.mxu0 %vm125_vm3, %v3684_v24  ;;  %2890 = vmatprep.mubr.msk.f32.mxu1 %vm125_vm3, %v3684_v24 }
  0x4d   :  { %3201 = vmatprep.subr.bf16.mxu0 %v3200_v53 }
  0x4e   :  { %2875 = vmatmul.mubr.msk.f32.gmra.mrb[28].mxu0 %vm125_vm3, %v3703_v26 }
  0x4f   :  { %2891 = vmatmul.mubr.msk.f32.gmra.mrb[28].mxu1 %vm125_vm3, %v3703_v26  ;;  %3203 = vmatpush3.bf16.msra.mxu0 %v3200_v53 }
  0x50   :  { %2877 = vmatprep.mubr.msk.f32.mxu0 %vm125_vm3, %v3710_v27  ;;  %2893 = vmatprep.mubr.msk.f32.mxu1 %vm125_vm3, %v3710_v27 }
  0x51   :  { %3205 = vmatprep.subr.bf16.mxu0 %v3204_v56 }
  0x52   :  { %2878 = vmatmul.mubr.msk.f32.gmra.mrb[30].mxu0 %vm125_vm3, %v3732_v31 }
  0x53   :  { %2894 = vmatmul.mubr.msk.f32.gmra.mrb[30].mxu1 %vm125_vm3, %v3732_v31  ;;  %3207 = vmatpush3.bf16.msra.mxu0 %v3204_v56 }
  0x54   :  { %2912 = vmatprep.mubr.msk.f32.mxu0 %vm1124_vm5, %v3880_v57  ;;  %2940 = vmatprep.mubr.msk.f32.mxu1 %vm1124_vm5, %v3880_v57 }
  0x56   :  { %2913 = vmatmul.mubr.msk.f32.vlgmr.msra.gmra.mrb[32].mxu0 %vm1124_vm5, %v3889_v58 }
  0x57   :  { %2915 = vmatprep.mubr.msk.f32.mxu0 %vm1124_vm5, %v3896_v59 }
  0x5a   :  { %2916 = vmatmul.mubr.msk.f32.gmra.mrb[34].mxu0 %vm1124_vm5, %v3907_v60 }
  0x5b   :  { %2918 = vmatprep.mubr.msk.f32.mxu0 %vm1124_vm5, %v3912_v61 }
  0x5e   :  { %2919 = vmatmul.mubr.msk.f32.gmra.mrb[36].mxu0 %vm1124_vm5, %v3921_v62 }
  0x5f   :  { %2921 = vmatprep.mubr.msk.f32.mxu0 %vm1124_vm5, %v3926_v63 }
  0x62   :  { %2922 = vmatmul.mubr.msk.f32.gmra.mrb[38].mxu0 %vm1124_vm5, %v3935_v0 }
  0x63   :  { %2968 = vmatprep.mubr.msk.f32.mxu0 %vm1124_vm5, %v3880_v57 }
  0x9b   :  { %v3941_v1 = vpop.permute.xlu0 %85 }
  0x9c   :  { %v3943_v2 = vpop.permute.xlu1 %95 }
  0x9f   :  { %v3945_v3 = vpop.permute.xlu0 %90 }
  0xa0   :  { %v3947_v4 = vpop.permute.xlu1 %100 }
  0xa3   :  { %v3953_v13 = vpop.permute.xlu0 %105 }
  0xa4   :  { %v3957_v16 = vpop.permute.xlu1 %110 }
  0xab   :  { %v3971_v29 = vpop.permute.xlu1 %120 }
  0xac   :  { %v3975_v32 = vpop.permute.xlu0 %115 }
  0xe9   :  { %v2774_v5 = vpop.f32.mrb[0].mxu0 }
  0xea   :  { %v226_v6 = vadd.f32 %v2774_v5, %v3945_v3  ;;  %v220_v7 = vpop.f32.mrb[1].mxu0  ;;  %v2790_v9 = vpop.f32.mrb[0].mxu1 }
  0xeb   :  { %v221_v10 = vadd.f32 %v220_v7, %v3941_v1  ;;  %v346_v11 = vadd.f32 %v2790_v9, %v3945_v3  ;;  %v340_v12 = vpop.f32.mrb[1].mxu1 }
  0xec   :  { %261 = vst.msk [vmem:[#allocation3 + $0x8] sm:$0xff] %vm50_vm4, %v226_v6  ;;  %v341_v14 = vadd.f32 %v340_v12, %v3941_v1 }
  0xed   :  { %260 = vst.msk [vmem:[#allocation3] sm:$0xff] %vm50_vm4, %v221_v10  ;;  %v2777_v15 = vpop.f32.mrb[2].mxu0  ;;  %381 = vst.msk [vmem:[#allocation3 + $0x48] sm:$0xff] %vm50_vm4, %v346_v11 }
  0xee   :  { %v236_v17 = vadd.f32 %v2777_v15, %v3947_v4  ;;  %v230_v18 = vpop.f32.mrb[3].mxu0  ;;  %380 = vst.msk [vmem:[#allocation3 + $0x40] sm:$0xff] %vm50_vm4, %v341_v14  ;;  %v2793_v19 = vpop.f32.mrb[2].mxu1 }
  0xef   :  { %v231_v20 = vadd.f32 %v230_v18, %v3943_v2  ;;  %v356_v21 = vadd.f32 %v2793_v19, %v3947_v4  ;;  %v350_v22 = vpop.f32.mrb[3].mxu1 }
  0xf0   :  { %263 = vst.msk [vmem:[#allocation3 + $0x18] sm:$0xff] %vm50_vm4, %v236_v17  ;;  %v351_v23 = vadd.f32 %v350_v22, %v3943_v2 }
  0xf1   :  { %262 = vst.msk [vmem:[#allocation3 + $0x10] sm:$0xff] %vm50_vm4, %v231_v20  ;;  %v2780_v24 = vpop.f32.mrb[4].mxu0  ;;  %383 = vst.msk [vmem:[#allocation3 + $0x58] sm:$0xff] %vm50_vm4, %v356_v21 }
  0xf2   :  { %v246_v25 = vadd.f32 %v2780_v24, %v3957_v16  ;;  %v240_v26 = vpop.f32.mrb[5].mxu0  ;;  %382 = vst.msk [vmem:[#allocation3 + $0x50] sm:$0xff] %vm50_vm4, %v351_v23  ;;  %v2796_v27 = vpop.f32.mrb[4].mxu1 }
  0xf3   :  { %v241_v28 = vadd.f32 %v240_v26, %v3953_v13  ;;  %v366_v30 = vadd.f32 %v2796_v27, %v3957_v16  ;;  %v360_v31 = vpop.f32.mrb[5].mxu1 }
  0xf4   :  { %265 = vst.msk [vmem:[#allocation3 + $0x28] sm:$0xff] %vm50_vm4, %v246_v25  ;;  %v361_v33 = vadd.f32 %v360_v31, %v3953_v13 }
  0xf5   :  { %264 = vst.msk [vmem:[#allocation3 + $0x20] sm:$0xff] %vm50_vm4, %v241_v28  ;;  %v2783_v34 = vpop.f32.mrb[6].mxu0  ;;  %385 = vst.msk [vmem:[#allocation3 + $0x68] sm:$0xff] %vm50_vm4, %v366_v30 }
  0xf6   :  { %v256_v35 = vadd.f32 %v2783_v34, %v3971_v29  ;;  %v250_v36 = vpop.f32.mrb[7].mxu0  ;;  %384 = vst.msk [vmem:[#allocation3 + $0x60] sm:$0xff] %vm50_vm4, %v361_v33  ;;  %v2799_v37 = vpop.f32.mrb[6].mxu1 }
  0xf7   :  { %v251_v38 = vadd.f32 %v250_v36, %v3975_v32  ;;  %v376_v39 = vadd.f32 %v2799_v37, %v3971_v29  ;;  %v370_v40 = vpop.f32.mrb[7].mxu1 }
  0xf8   :  { %267 = vst.msk [vmem:[#allocation3 + $0x38] sm:$0xff] %vm50_vm4, %v256_v35  ;;  %v371_v41 = vadd.f32 %v370_v40, %v3975_v32 }
  0xf9   :  { %266 = vst.msk [vmem:[#allocation3 + $0x30] sm:$0xff] %vm50_vm4, %v251_v38  ;;  %v2806_v42 = vpop.f32.mrb[8].mxu0  ;;  %387 = vst.msk [vmem:[#allocation3 + $0x78] sm:$0xff] %vm50_vm4, %v376_v39 }
  0xfa   :  { %v466_v43 = vadd.f32 %v2806_v42, %v3945_v3  ;;  %v460_v44 = vpop.f32.mrb[9].mxu0  ;;  %386 = vst.msk [vmem:[#allocation3 + $0x70] sm:$0xff] %vm50_vm4, %v371_v41  ;;  %v2822_v45 = vpop.f32.mrb[8].mxu1 }
  0xfb   :  { %v461_v46 = vadd.f32 %v460_v44, %v3941_v1  ;;  %v586_v47 = vadd.f32 %v2822_v45, %v3945_v3  ;;  %v580_v48 = vpop.f32.mrb[9].mxu1 }
  0xfc   :  { %501 = vst.msk [vmem:[#allocation3 + $0x88] sm:$0xff] %vm50_vm4, %v466_v43  ;;  %v581_v49 = vadd.f32 %v580_v48, %v3941_v1 }
  0xfd   :  { %500 = vst.msk [vmem:[#allocation3 + $0x80] sm:$0xff] %vm50_vm4, %v461_v46  ;;  %v2809_v50 = vpop.f32.mrb[10].mxu0  ;;  %621 = vst.msk [vmem:[#allocation3 + $0xc8] sm:$0xff] %vm50_vm4, %v586_v47 }
  0xfe   :  { %v476_v51 = vadd.f32 %v2809_v50, %v3947_v4  ;;  %v470_v52 = vpop.f32.mrb[11].mxu0  ;;  %620 = vst.msk [vmem:[#allocation3 + $0xc0] sm:$0xff] %vm50_vm4, %v581_v49  ;;  %v2825_v53 = vpop.f32.mrb[10].mxu1 }
  0xff   :  { %v471_v54 = vadd.f32 %v470_v52, %v3943_v2  ;;  %v596_v55 = vadd.f32 %v2825_v53, %v3947_v4  ;;  %v590_v56 = vpop.f32.mrb[11].mxu1 }
 0x100   :  { %503 = vst.msk [vmem:[#allocation3 + $0x98] sm:$0xff] %vm50_vm4, %v476_v51  ;;  %v591_v5 = vadd.f32 %v590_v56, %v3943_v2 }
 0x101   :  { %502 = vst.msk [vmem:[#allocation3 + $0x90] sm:$0xff] %vm50_vm4, %v471_v54  ;;  %v2812_v6 = vpop.f32.mrb[12].mxu0  ;;  %623 = vst.msk [vmem:[#allocation3 + $0xd8] sm:$0xff] %vm50_vm4, %v596_v55 }
 0x102   :  { %v486_v7 = vadd.f32 %v2812_v6, %v3957_v16  ;;  %v480_v9 = vpop.f32.mrb[13].mxu0  ;;  %622 = vst.msk [vmem:[#allocation3 + $0xd0] sm:$0xff] %vm50_vm4, %v591_v5  ;;  %v2828_v10 = vpop.f32.mrb[12].mxu1 }
 0x103   :  { %v481_v11 = vadd.f32 %v480_v9, %v3953_v13  ;;  %v606_v12 = vadd.f32 %v2828_v10, %v3957_v16  ;;  %v600_v14 = vpop.f32.mrb[13].mxu1 }
 0x104   :  { %505 = vst.msk [vmem:[#allocation3 + $0xa8] sm:$0xff] %vm50_vm4, %v486_v7  ;;  %v601_v15 = vadd.f32 %v600_v14, %v3953_v13 }
 0x105   :  { %504 = vst.msk [vmem:[#allocation3 + $0xa0] sm:$0xff] %vm50_vm4, %v481_v11  ;;  %v2815_v17 = vpop.f32.mrb[14].mxu0  ;;  %625 = vst.msk [vmem:[#allocation3 + $0xe8] sm:$0xff] %vm50_vm4, %v606_v12 }
 0x106   :  { %v496_v18 = vadd.f32 %v2815_v17, %v3971_v29  ;;  %v490_v19 = vpop.f32.mrb[15].mxu0  ;;  %624 = vst.msk [vmem:[#allocation3 + $0xe0] sm:$0xff] %vm50_vm4, %v601_v15  ;;  %v2831_v20 = vpop.f32.mrb[14].mxu1 }
 0x107   :  { %v491_v21 = vadd.f32 %v490_v19, %v3975_v32  ;;  %v616_v22 = vadd.f32 %v2831_v20, %v3971_v29  ;;  %v610_v23 = vpop.f32.mrb[15].mxu1 }
 0x108   :  { %507 = vst.msk [vmem:[#allocation3 + $0xb8] sm:$0xff] %vm50_vm4, %v496_v18  ;;  %v611_v24 = vadd.f32 %v610_v23, %v3975_v32 }
 0x109   :  { %506 = vst.msk [vmem:[#allocation3 + $0xb0] sm:$0xff] %vm50_vm4, %v491_v21  ;;  %v2838_v25 = vpop.f32.mrb[16].mxu0  ;;  %627 = vst.msk [vmem:[#allocation3 + $0xf8] sm:$0xff] %vm50_vm4, %v616_v22 }
 0x10a   :  { %v706_v26 = vadd.f32 %v2838_v25, %v3945_v3  ;;  %v700_v27 = vpop.f32.mrb[17].mxu0  ;;  %626 = vst.msk [vmem:[#allocation3 + $0xf0] sm:$0xff] %vm50_vm4, %v611_v24  ;;  %v2854_v28 = vpop.f32.mrb[16].mxu1 }
 0x10b   :  { %v701_v30 = vadd.f32 %v700_v27, %v3941_v1  ;;  %v826_v31 = vadd.f32 %v2854_v28, %v3945_v3  ;;  %v820_v33 = vpop.f32.mrb[17].mxu1 }
 0x10c   :  { %741 = vst.msk [vmem:[#allocation3 + $0x108] sm:$0xff] %vm50_vm4, %v706_v26  ;;  %v821_v34 = vadd.f32 %v820_v33, %v3941_v1 }
 0x10d   :  { %740 = vst.msk [vmem:[#allocation3 + $0x100] sm:$0xff] %vm50_vm4, %v701_v30  ;;  %v2841_v35 = vpop.f32.mrb[18].mxu0  ;;  %861 = vst.msk [vmem:[#allocation3 + $0x148] sm:$0xff] %vm50_vm4, %v826_v31 }
 0x10e   :  { %v716_v36 = vadd.f32 %v2841_v35, %v3947_v4  ;;  %v710_v37 = vpop.f32.mrb[19].mxu0  ;;  %860 = vst.msk [vmem:[#allocation3 + $0x140] sm:$0xff] %vm50_vm4, %v821_v34  ;;  %v2857_v38 = vpop.f32.mrb[18].mxu1 }
 0x10f   :  { %v711_v39 = vadd.f32 %v710_v37, %v3943_v2  ;;  %v836_v40 = vadd.f32 %v2857_v38, %v3947_v4  ;;  %v830_v41 = vpop.f32.mrb[19].mxu1  ;;  %v1117_v38 = vld [vmem:[#allocation3 + $0x8] sm:$0xff] }
 0x110   :  { %743 = vst.msk [vmem:[#allocation3 + $0x118] sm:$0xff] %vm50_vm4, %v716_v36  ;;  %v831_v42 = vadd.f32 %v830_v41, %v3943_v2  ;;  %v1116_v41 = vld [vmem:[#allocation3] sm:$0xff] }
 0x111   :  { %742 = vst.msk [vmem:[#allocation3 + $0x110] sm:$0xff] %vm50_vm4, %v711_v39  ;;  %v2844_v43 = vpop.f32.mrb[20].mxu0  ;;  %863 = vst.msk [vmem:[#allocation3 + $0x158] sm:$0xff] %vm50_vm4, %v836_v40 }
 0x112   :  { %v726_v44 = vadd.f32 %v2844_v43, %v3957_v16  ;;  %v720_v45 = vpop.f32.mrb[21].mxu0  ;;  %862 = vst.msk [vmem:[#allocation3 + $0x150] sm:$0xff] %vm50_vm4, %v831_v42  ;;  %v2860_v46 = vpop.f32.mrb[20].mxu1 }
 0x113   :  { %v721_v47 = vadd.f32 %v720_v45, %v3953_v13  ;;  %v846_v48 = vadd.f32 %v2860_v46, %v3957_v16  ;;  %v840_v49 = vpop.f32.mrb[21].mxu1  ;;  %v1118_v46 = vld [vmem:[#allocation3 + $0x10] sm:$0xff] }
 0x114   :  { %745 = vst.msk [vmem:[#allocation3 + $0x128] sm:$0xff] %vm50_vm4, %v726_v44  ;;  %v841_v50 = vadd.f32 %v840_v49, %v3953_v13 }
 0x115   :  { %744 = vst.msk [vmem:[#allocation3 + $0x120] sm:$0xff] %vm50_vm4, %v721_v47  ;;  %v2847_v51 = vpop.f32.mrb[22].mxu0  ;;  %865 = vst.msk [vmem:[#allocation3 + $0x168] sm:$0xff] %vm50_vm4, %v846_v48  ;;  %v1121_v48 = vld [vmem:[#allocation3 + $0x28] sm:$0xff] }
 0x116   :  { %v736_v52 = vadd.f32 %v2847_v51, %v3971_v29  ;;  %v730_v53 = vpop.f32.mrb[23].mxu0  ;;  %864 = vst.msk [vmem:[#allocation3 + $0x160] sm:$0xff] %vm50_vm4, %v841_v50  ;;  %v2863_v54 = vpop.f32.mrb[22].mxu1  ;;  %v1120_v51 = vld [vmem:[#allocation3 + $0x20] sm:$0xff] }
 0x117   :  { %v731_v55 = vadd.f32 %v730_v53, %v3975_v32  ;;  %v856_v56 = vadd.f32 %v2863_v54, %v3971_v29  ;;  %v850_v5 = vpop.f32.mrb[23].mxu1  ;;  %v1123_v54 = vld [vmem:[#allocation3 + $0x38] sm:$0xff] }
 0x118   :  { %747 = vst.msk [vmem:[#allocation3 + $0x138] sm:$0xff] %vm50_vm4, %v736_v52  ;;  %v851_v6 = vadd.f32 %v850_v5, %v3975_v32 }
 0x119   :  { %746 = vst.msk [vmem:[#allocation3 + $0x130] sm:$0xff] %vm50_vm4, %v731_v55  ;;  %867 = vst.msk [vmem:[#allocation3 + $0x178] sm:$0xff] %vm50_vm4, %v856_v56  ;;  %v2870_v7 = vpop.f32.mrb[24].mxu0 }
 0x11a   :  { %v946_v9 = vadd.f32 %v2870_v7, %v3945_v3  ;;  %866 = vst.msk [vmem:[#allocation3 + $0x170] sm:$0xff] %vm50_vm4, %v851_v6  ;;  %v940_v10 = vpop.f32.mrb[25].mxu0  ;;  %v2886_v11 = vpop.f32.mrb[24].mxu1  ;;  %v1122_v6 = vld [vmem:[#allocation3 + $0x30] sm:$0xff] }
 0x11b   :  { %v941_v12 = vadd.f32 %v940_v10, %v3941_v1  ;;  %v1066_v14 = vadd.f32 %v2886_v11, %v3945_v3  ;;  %v1060_v15 = vpop.f32.mrb[25].mxu1 }
 0x11c   :  { %981 = vst.msk [vmem:[#allocation3 + $0x188] sm:$0xff] %vm50_vm4, %v946_v9  ;;  %v1061_v17 = vadd.f32 %v1060_v15, %v3941_v1 }
 0x11d   :  { %980 = vst.msk [vmem:[#allocation3 + $0x180] sm:$0xff] %vm50_vm4, %v941_v12  ;;  %1101 = vst.msk [vmem:[#allocation3 + $0x1c8] sm:$0xff] %vm50_vm4, %v1066_v14  ;;  %v2873_v18 = vpop.f32.mrb[26].mxu0 }
 0x11e   :  { %1100 = vst.msk [vmem:[#allocation3 + $0x1c0] sm:$0xff] %vm50_vm4, %v1061_v17  ;;  %v956_v19 = vadd.f32 %v2873_v18, %v3947_v4  ;;  %v950_v20 = vpop.f32.mrb[27].mxu0  ;;  %v2889_v21 = vpop.f32.mrb[26].mxu1 }
 0x11f   :  { %v951_v22 = vadd.f32 %v950_v20, %v3943_v2  ;;  %v1076_v3 = vadd.f32 %v2889_v21, %v3947_v4  ;;  %v1070_v23 = vpop.f32.mrb[27].mxu1 }
 0x120   :  { %983 = vst.msk [vmem:[#allocation3 + $0x198] sm:$0xff] %vm50_vm4, %v956_v19  ;;  %v1071_v1 = vadd.f32 %v1070_v23, %v3943_v2 }
 0x121   :  { %982 = vst.msk [vmem:[#allocation3 + $0x190] sm:$0xff] %vm50_vm4, %v951_v22  ;;  %1103 = vst.msk [vmem:[#allocation3 + $0x1d8] sm:$0xff] %vm50_vm4, %v1076_v3  ;;  %v2876_v24 = vpop.f32.mrb[28].mxu0  ;;  %v1271_v3 = vld [vmem:[#allocation3 + $0x48] sm:$0xff] }
 0x122   :  { %1102 = vst.msk [vmem:[#allocation3 + $0x1d0] sm:$0xff] %vm50_vm4, %v1071_v1  ;;  %v966_v25 = vadd.f32 %v2876_v24, %v3957_v16  ;;  %v2892_v26 = vpop.f32.mrb[28].mxu1  ;;  %v960_v27 = vpop.f32.mrb[29].mxu0  ;;  %v1270_v24 = vld [vmem:[#allocation3 + $0x40] sm:$0xff] }
 0x123   :  { %v1086_v28 = vadd.f32 %v2892_v26, %v3957_v16  ;;  %v961_v4 = vadd.f32 %v960_v27, %v3953_v13  ;;  %v1080_v30 = vpop.f32.mrb[29].mxu1  ;;  %v1273_v27 = vld [vmem:[#allocation3 + $0x58] sm:$0xff] }
 0x124   :  { %985 = vst.msk [vmem:[#allocation3 + $0x1a8] sm:$0xff] %vm50_vm4, %v966_v25  ;;  %v1081_v2 = vadd.f32 %v1080_v30, %v3953_v13  ;;  %v1272_v30 = vld [vmem:[#allocation3 + $0x50] sm:$0xff] }
 0x125   :  { %1105 = vst.msk [vmem:[#allocation3 + $0x1e8] sm:$0xff] %vm50_vm4, %v1086_v28  ;;  %984 = vst.msk [vmem:[#allocation3 + $0x1a0] sm:$0xff] %vm50_vm4, %v961_v4  ;;  %v2879_v31 = vpop.f32.mrb[30].mxu0 }
 0x126   :  { %1104 = vst.msk [vmem:[#allocation3 + $0x1e0] sm:$0xff] %vm50_vm4, %v1081_v2  ;;  %v976_v33 = vadd.f32 %v2879_v31, %v3971_v29  ;;  %v2895_v34 = vpop.f32.mrb[30].mxu1  ;;  %v970_v35 = vpop.f32.mrb[31].mxu0 }
 0x127   :  { %v1096_v16 = vadd.f32 %v2895_v34, %v3971_v29  ;;  %v971_v36 = vadd.f32 %v970_v35, %v3975_v32  ;;  %v1090_v37 = vpop.f32.mrb[31].mxu1  ;;  %v1119_v29 = vld [vmem:[#allocation3 + $0x18] sm:$0xff] }
 0x128   :  { %987 = vst.msk [vmem:[#allocation3 + $0x1b8] sm:$0xff] %vm50_vm4, %v976_v33  ;;  %v1091_v13 = vadd.f32 %v1090_v37, %v3975_v32  ;;  %v1275_v33 = vld [vmem:[#allocation3 + $0x68] sm:$0xff] }
 0x129   :  { %1107 = vst.msk [vmem:[#allocation3 + $0x1f8] sm:$0xff] %vm50_vm4, %v1096_v16  ;;  %986 = vst.msk [vmem:[#allocation3 + $0x1b0] sm:$0xff] %vm50_vm4, %v971_v36  ;;  %v2914_v39 = vpop.f32.mrb[32].mxu0  ;;  %v1274_v16 = vld [vmem:[#allocation3 + $0x60] sm:$0xff] }
 0x12a   :  { %1106 = vst.msk [vmem:[#allocation3 + $0x1f0] sm:$0xff] %vm50_vm4, %v1091_v13  ;;  %v1255_v40 = vadd.f32 %v2914_v39, %v1117_v38  ;;  %v1215_v42 = vpop.f32.mrb[33].mxu0  ;;  %v1277_v13 = vld [vmem:[#allocation3 + $0x78] sm:$0xff] }
 0x12b   :  { %v1254_v43 = vadd.f32 %v1215_v42, %v1116_v41  ;;  %v1276_v41 = vld [vmem:[#allocation3 + $0x70] sm:$0xff] }
 0x12c   :  { %3341 = vtanh.f32 %v1255_v40 }
 0x12d   :  { %3343 = vtanh.f32 %v1254_v43  ;;  %v2917_v44 = vpop.f32.mrb[34].mxu0 }
 0x12e   :  { %v1257_v45 = vadd.f32 %v2917_v44, %v1119_v29  ;;  %v1225_v47 = vpop.f32.mrb[35].mxu0 }
 0x12f   :  { %v1256_v32 = vadd.f32 %v1225_v47, %v1118_v46 }
 0x130   :  { %3345 = vtanh.f32 %v1257_v45 }
 0x131   :  { %3347 = vtanh.f32 %v1256_v32  ;;  %v2920_v49 = vpop.f32.mrb[36].mxu0 }
 0x132   :  { %v1259_v50 = vadd.f32 %v2920_v49, %v1121_v48  ;;  %v1235_v52 = vpop.f32.mrb[37].mxu0 }
 0x133   :  { %v1258_v53 = vadd.f32 %v1235_v52, %v1120_v51 }
 0x134   :  { %3349 = vtanh.f32 %v1259_v50 }
 0x135   :  { %3351 = vtanh.f32 %v1258_v53  ;;  %v2923_v55 = vpop.f32.mrb[38].mxu0  ;;  %v1400_v53 = vld [vmem:[#allocation3 + $0x88] sm:$0xff] }
 0x136   :  { %v3342_v56 = vpop.eup %3341  ;;  %v1261_v5 = vadd.f32 %v2923_v55, %v1123_v54  ;;  %v1245_v7 = vpop.f32.mrb[39].mxu0 }
 0x137   :  { %v3344_v9 = vpop.eup %3343  ;;  %v1260_v10 = vadd.f32 %v1245_v7, %v1122_v6  ;;  %v1402_v7 = vld [vmem:[#allocation3 + $0x98] sm:$0xff] }
 0x138   :  { %3353 = vtanh.f32 %v1261_v5  ;;  %v3208_v11 = vpack.c.bf16 %v3342_v56, %v3344_v9  ;;  %v1399_v56 = vld [vmem:[#allocation3 + $0x80] sm:$0xff] }
 0x139   :  { %3355 = vtanh.f32 %v1260_v10 }
 0x13a   :  { %v3346_v12 = vpop.eup %3345  ;;  %3209 = vmatprep.subr.bf16.mxu1 %v3208_v11 }
 0x13b   :  { %v3348_v14 = vpop.eup %3347  ;;  %3211 = vmatpush3.bf16.msra.mxu1 %v3208_v11  ;;  %v1401_v11 = vld [vmem:[#allocation3 + $0x90] sm:$0xff] }
 0x13c   :  { %v3212_v15 = vpack.c.bf16 %v3346_v12, %v3348_v14 }
 0x13e   :  { %v3350_v17 = vpop.eup %3349  ;;  %3213 = vmatprep.subr.bf16.mxu1 %v3212_v15 }
 0x13f   :  { %v3352_v18 = vpop.eup %3351  ;;  %3215 = vmatpush3.bf16.msra.mxu1 %v3212_v15  ;;  %v1404_v15 = vld [vmem:[#allocation3 + $0xa8] sm:$0xff] }
 0x140   :  { %v3216_v19 = vpack.c.bf16 %v3350_v17, %v3352_v18 }
 0x142   :  { %v3354_v20 = vpop.eup %3353  ;;  %3217 = vmatprep.subr.bf16.mxu1 %v3216_v19 }
 0x143   :  { %v3356_v21 = vpop.eup %3355  ;;  %3219 = vmatpush3.bf16.msra.mxu1 %v3216_v19  ;;  %v1403_v19 = vld [vmem:[#allocation3 + $0xa0] sm:$0xff] }
 0x144   :  { %v3220_v22 = vpack.c.bf16 %v3354_v20, %v3356_v21 }
 0x146   :  { %3221 = vmatprep.subr.bf16.mxu1 %v3220_v22 }
 0x147   :  { %3223 = vmatpush3.bf16.msra.mxu1 %v3220_v22  ;;  %v1406_v22 = vld [vmem:[#allocation3 + $0xb8] sm:$0xff] }
 0x14a   :  { %2941 = vmatmul.mubr.msk.f32.vlgmr.msra.gmra.mrb[32].mxu1 %vm1124_vm5, %v3889_v58 }
 0x14b   :  { %2943 = vmatprep.mubr.msk.f32.mxu1 %vm1124_vm5, %v3896_v59 }
 0x14e   :  { %2944 = vmatmul.mubr.msk.f32.gmra.mrb[34].mxu1 %vm1124_vm5, %v3907_v60 }
 0x14f   :  { %2946 = vmatprep.mubr.msk.f32.mxu1 %vm1124_vm5, %v3912_v61 }
 0x152   :  { %2947 = vmatmul.mubr.msk.f32.gmra.mrb[36].mxu1 %vm1124_vm5, %v3921_v62 }
 0x153   :  { %2949 = vmatprep.mubr.msk.f32.mxu1 %vm1124_vm5, %v3926_v63 }
 0x156   :  { %2950 = vmatmul.mubr.msk.f32.gmra.mrb[38].mxu1 %vm1124_vm5, %v3935_v0 }
 0x157   :  { %2996 = vmatprep.mubr.msk.f32.mxu1 %vm1124_vm5, %v3880_v57 }
 0x21d   :  { %v2942_v23 = vpop.f32.mrb[32].mxu1 }
 0x21e   :  { %v1384_v1 = vadd.f32 %v2942_v23, %v1271_v3  ;;  %v1344_v25 = vpop.f32.mrb[33].mxu1 }
 0x21f   :  { %v1383_v26 = vadd.f32 %v1344_v25, %v1270_v24  ;;  %v1405_v24 = vld [vmem:[#allocation3 + $0xb0] sm:$0xff] }
 0x220   :  { %3357 = vtanh.f32 %v1384_v1 }
 0x221   :  { %3359 = vtanh.f32 %v1383_v26  ;;  %v2945_v28 = vpop.f32.mrb[34].mxu1 }
 0x222   :  { %v1386_v4 = vadd.f32 %v2945_v28, %v1273_v27  ;;  %v1354_v2 = vpop.f32.mrb[35].mxu1 }
 0x223   :  { %v1385_v31 = vadd.f32 %v1354_v2, %v1272_v30 }
 0x224   :  { %3361 = vtanh.f32 %v1386_v4 }
 0x225   :  { %3363 = vtanh.f32 %v1385_v31  ;;  %v2948_v34 = vpop.f32.mrb[36].mxu1 }
 0x226   :  { %v1388_v35 = vadd.f32 %v2948_v34, %v1275_v33  ;;  %v1364_v36 = vpop.f32.mrb[37].mxu1 }
 0x227   :  { %v1387_v37 = vadd.f32 %v1364_v36, %v1274_v16 }
 0x228   :  { %3365 = vtanh.f32 %v1388_v35 }
 0x229   :  { %3367 = vtanh.f32 %v1387_v37  ;;  %v2951_v38 = vpop.f32.mrb[38].mxu1  ;;  %v1529_v37 = vld [vmem:[#allocation3 + $0xc8] sm:$0xff] }
 0x22a   :  { %v3358_v39 = vpop.eup %3357  ;;  %v1390_v40 = vadd.f32 %v2951_v38, %v1277_v13  ;;  %v1374_v42 = vpop.f32.mrb[39].mxu1 }
 0x22b   :  { %v3360_v43 = vpop.eup %3359  ;;  %v1389_v29 = vadd.f32 %v1374_v42, %v1276_v41  ;;  %v1531_v42 = vld [vmem:[#allocation3 + $0xd8] sm:$0xff] }
 0x22c   :  { %3369 = vtanh.f32 %v1390_v40  ;;  %v3224_v44 = vpack.c.bf16 %v3358_v39, %v3360_v43  ;;  %v1528_v39 = vld [vmem:[#allocation3 + $0xc0] sm:$0xff] }
 0x22d   :  { %3371 = vtanh.f32 %v1389_v29 }
 0x22e   :  { %v3362_v45 = vpop.eup %3361  ;;  %3225 = vmatprep.subr.bf16.mxu0 %v3224_v44 }
 0x22f   :  { %v3364_v46 = vpop.eup %3363  ;;  %3227 = vmatpush3.bf16.msra.mxu0 %v3224_v44  ;;  %v1530_v44 = vld [vmem:[#allocation3 + $0xd0] sm:$0xff] }
 0x230   :  { %v3228_v47 = vpack.c.bf16 %v3362_v45, %v3364_v46 }
 0x232   :  { %v3366_v32 = vpop.eup %3365  ;;  %3229 = vmatprep.subr.bf16.mxu0 %v3228_v47 }
 0x233   :  { %v3368_v48 = vpop.eup %3367  ;;  %3231 = vmatpush3.bf16.msra.mxu0 %v3228_v47  ;;  %v1533_v47 = vld [vmem:[#allocation3 + $0xe8] sm:$0xff] }
 0x234   :  { %v3232_v49 = vpack.c.bf16 %v3366_v32, %v3368_v48 }
 0x236   :  { %v3370_v50 = vpop.eup %3369  ;;  %3233 = vmatprep.subr.bf16.mxu0 %v3232_v49 }
 0x237   :  { %v3372_v51 = vpop.eup %3371  ;;  %3235 = vmatpush3.bf16.msra.mxu0 %v3232_v49  ;;  %v1532_v49 = vld [vmem:[#allocation3 + $0xe0] sm:$0xff] }
 0x238   :  { %v3236_v52 = vpack.c.bf16 %v3370_v50, %v3372_v51 }
 0x23a   :  { %3237 = vmatprep.subr.bf16.mxu0 %v3236_v52 }
 0x23b   :  { %3239 = vmatpush3.bf16.msra.mxu0 %v3236_v52  ;;  %v1535_v52 = vld [vmem:[#allocation3 + $0xf8] sm:$0xff] }
 0x23e   :  { %2969 = vmatmul.mubr.msk.f32.vlgmr.msra.gmra.mrb[40].mxu0 %vm1124_vm5, %v3889_v58 }
 0x23f   :  { %2971 = vmatprep.mubr.msk.f32.mxu0 %vm1124_vm5, %v3896_v59 }
 0x242   :  { %2972 = vmatmul.mubr.msk.f32.gmra.mrb[42].mxu0 %vm1124_vm5, %v3907_v60 }
 0x243   :  { %2974 = vmatprep.mubr.msk.f32.mxu0 %vm1124_vm5, %v3912_v61 }
 0x246   :  { %2975 = vmatmul.mubr.msk.f32.gmra.mrb[44].mxu0 %vm1124_vm5, %v3921_v62 }
 0x247   :  { %2977 = vmatprep.mubr.msk.f32.mxu0 %vm1124_vm5, %v3926_v63 }
 0x24a   :  { %2978 = vmatmul.mubr.msk.f32.gmra.mrb[46].mxu0 %vm1124_vm5, %v3935_v0 }
 0x24b   :  { %3024 = vmatprep.mubr.msk.f32.mxu0 %vm1124_vm5, %v3880_v57 }
 0x311   :  { %v2970_v54 = vpop.f32.mrb[40].mxu0 }
 0x312   :  { %v1513_v55 = vadd.f32 %v2970_v54, %v1400_v53  ;;  %v1473_v5 = vpop.f32.mrb[41].mxu0 }
 0x313   :  { %v1512_v6 = vadd.f32 %v1473_v5, %v1399_v56  ;;  %v1534_v56 = vld [vmem:[#allocation3 + $0xf0] sm:$0xff] }
 0x314   :  { %3373 = vtanh.f32 %v1513_v55 }
 0x315   :  { %3375 = vtanh.f32 %v1512_v6  ;;  %v2973_v9 = vpop.f32.mrb[42].mxu0 }
 0x316   :  { %v1515_v10 = vadd.f32 %v2973_v9, %v1402_v7  ;;  %v1483_v12 = vpop.f32.mrb[43].mxu0 }
 0x317   :  { %v1514_v14 = vadd.f32 %v1483_v12, %v1401_v11 }
 0x318   :  { %3377 = vtanh.f32 %v1515_v10 }
 0x319   :  { %3379 = vtanh.f32 %v1514_v14  ;;  %v2976_v17 = vpop.f32.mrb[44].mxu0 }
 0x31a   :  { %v1517_v18 = vadd.f32 %v2976_v17, %v1404_v15  ;;  %v1493_v20 = vpop.f32.mrb[45].mxu0 }
 0x31b   :  { %v1516_v21 = vadd.f32 %v1493_v20, %v1403_v19 }
 0x31c   :  { %3381 = vtanh.f32 %v1517_v18 }
 0x31d   :  { %3383 = vtanh.f32 %v1516_v21  ;;  %v2979_v3 = vpop.f32.mrb[46].mxu0  ;;  %v1658_v21 = vld [vmem:[#allocation3 + $0x108] sm:$0xff] }
 0x31e   :  { %v3374_v23 = vpop.eup %3373  ;;  %v1519_v1 = vadd.f32 %v2979_v3, %v1406_v22  ;;  %v1503_v25 = vpop.f32.mrb[47].mxu0 }
 0x31f   :  { %v3376_v26 = vpop.eup %3375  ;;  %v1518_v27 = vadd.f32 %v1503_v25, %v1405_v24  ;;  %v1660_v25 = vld [vmem:[#allocation3 + $0x118] sm:$0xff] }
 0x320   :  { %3385 = vtanh.f32 %v1519_v1  ;;  %v3240_v28 = vpack.c.bf16 %v3374_v23, %v3376_v26  ;;  %v1657_v23 = vld [vmem:[#allocation3 + $0x100] sm:$0xff] }
 0x321   :  { %3387 = vtanh.f32 %v1518_v27 }
 0x322   :  { %v3378_v4 = vpop.eup %3377  ;;  %3241 = vmatprep.subr.bf16.mxu1 %v3240_v28 }
 0x323   :  { %v3380_v30 = vpop.eup %3379  ;;  %3243 = vmatpush3.bf16.msra.mxu1 %v3240_v28  ;;  %v1659_v28 = vld [vmem:[#allocation3 + $0x110] sm:$0xff] }
 0x324   :  { %v3244_v2 = vpack.c.bf16 %v3378_v4, %v3380_v30 }
 0x326   :  { %v3382_v31 = vpop.eup %3381  ;;  %3245 = vmatprep.subr.bf16.mxu1 %v3244_v2 }
 0x327   :  { %v3384_v33 = vpop.eup %3383  ;;  %3247 = vmatpush3.bf16.msra.mxu1 %v3244_v2  ;;  %v1662_v2 = vld [vmem:[#allocation3 + $0x128] sm:$0xff] }
 0x328   :  { %v3248_v34 = vpack.c.bf16 %v3382_v31, %v3384_v33 }
 0x32a   :  { %v3386_v35 = vpop.eup %3385  ;;  %3249 = vmatprep.subr.bf16.mxu1 %v3248_v34 }
 0x32b   :  { %v3388_v16 = vpop.eup %3387  ;;  %3251 = vmatpush3.bf16.msra.mxu1 %v3248_v34 }
 0x32c   :  { %v3252_v36 = vpack.c.bf16 %v3386_v35, %v3388_v16  ;;  %v1664_v16 = vld [vmem:[#allocation3 + $0x138] sm:$0xff] }
 0x32e   :  { %3253 = vmatprep.subr.bf16.mxu1 %v3252_v36 }
 0x32f   :  { %3255 = vmatpush3.bf16.msra.mxu1 %v3252_v36 }
 0x332   :  { %2997 = vmatmul.mubr.msk.f32.vlgmr.msra.gmra.mrb[40].mxu1 %vm1124_vm5, %v3889_v58 }
 0x333   :  { %2999 = vmatprep.mubr.msk.f32.mxu1 %vm1124_vm5, %v3896_v59 }
 0x336   :  { %3000 = vmatmul.mubr.msk.f32.gmra.mrb[42].mxu1 %vm1124_vm5, %v3907_v60 }
 0x337   :  { %3002 = vmatprep.mubr.msk.f32.mxu1 %vm1124_vm5, %v3912_v61 }
 0x33a   :  { %3003 = vmatmul.mubr.msk.f32.gmra.mrb[44].mxu1 %vm1124_vm5, %v3921_v62 }
 0x33b   :  { %3005 = vmatprep.mubr.msk.f32.mxu1 %vm1124_vm5, %v3926_v63 }
 0x33e   :  { %3006 = vmatmul.mubr.msk.f32.gmra.mrb[46].mxu1 %vm1124_vm5, %v3935_v0 }
 0x33f   :  { %3052 = vmatprep.mubr.msk.f32.mxu1 %vm1124_vm5, %v3880_v57 }
 0x405   :  { %v2998_v13 = vpop.f32.mrb[40].mxu1 }
 0x406   :  { %v1642_v38 = vadd.f32 %v2998_v13, %v1529_v37  ;;  %v1602_v40 = vpop.f32.mrb[41].mxu1 }
 0x407   :  { %v1641_v41 = vadd.f32 %v1602_v40, %v1528_v39 }
 0x408   :  { %3389 = vtanh.f32 %v1642_v38  ;;  %v1663_v38 = vld [vmem:[#allocation3 + $0x130] sm:$0xff] }
 0x409   :  { %3391 = vtanh.f32 %v1641_v41  ;;  %v3001_v43 = vpop.f32.mrb[42].mxu1 }
 0x40a   :  { %v1644_v29 = vadd.f32 %v3001_v43, %v1531_v42  ;;  %v1612_v45 = vpop.f32.mrb[43].mxu1 }
 0x40b   :  { %v1643_v46 = vadd.f32 %v1612_v45, %v1530_v44 }
 0x40c   :  { %3393 = vtanh.f32 %v1644_v29 }
 0x40d   :  { %3395 = vtanh.f32 %v1643_v46  ;;  %v3004_v32 = vpop.f32.mrb[44].mxu1 }
 0x40e   :  { %v1646_v48 = vadd.f32 %v3004_v32, %v1533_v47  ;;  %v1622_v50 = vpop.f32.mrb[45].mxu1 }
 0x40f   :  { %v1645_v51 = vadd.f32 %v1622_v50, %v1532_v49 }
 0x410   :  { %3397 = vtanh.f32 %v1646_v48 }
 0x411   :  { %3399 = vtanh.f32 %v1645_v51  ;;  %v3007_v53 = vpop.f32.mrb[46].mxu1  ;;  %v1786_v51 = vld [vmem:[#allocation3 + $0x140] sm:$0xff] }
 0x412   :  { %v3390_v54 = vpop.eup %3389  ;;  %v1648_v55 = vadd.f32 %v3007_v53, %v1535_v52  ;;  %v1632_v5 = vpop.f32.mrb[47].mxu1 }
 0x413   :  { %v3392_v6 = vpop.eup %3391  ;;  %v1647_v7 = vadd.f32 %v1632_v5, %v1534_v56  ;;  %v1791_v56 = vld [vmem:[#allocation3 + $0x168] sm:$0xff] }
 0x414   :  { %3401 = vtanh.f32 %v1648_v55  ;;  %v3256_v9 = vpack.c.bf16 %v3390_v54, %v3392_v6  ;;  %v1788_v54 = vld [vmem:[#allocation3 + $0x150] sm:$0xff] }
 0x415   :  { %3403 = vtanh.f32 %v1647_v7  ;;  %v1790_v7 = vld [vmem:[#allocation3 + $0x160] sm:$0xff] }
 0x416   :  { %v3394_v10 = vpop.eup %3393  ;;  %3257 = vmatprep.subr.bf16.mxu0 %v3256_v9 }
 0x417   :  { %v3396_v11 = vpop.eup %3395  ;;  %3259 = vmatpush3.bf16.msra.mxu0 %v3256_v9 }
 0x418   :  { %v3260_v12 = vpack.c.bf16 %v3394_v10, %v3396_v11  ;;  %v1793_v11 = vld [vmem:[#allocation3 + $0x178] sm:$0xff] }
 0x41a   :  { %v3398_v14 = vpop.eup %3397  ;;  %3261 = vmatprep.subr.bf16.mxu0 %v3260_v12 }
 0x41b   :  { %v3400_v15 = vpop.eup %3399  ;;  %3263 = vmatpush3.bf16.msra.mxu0 %v3260_v12 }
 0x41c   :  { %v3264_v17 = vpack.c.bf16 %v3398_v14, %v3400_v15 }
 0x41e   :  { %v3402_v18 = vpop.eup %3401  ;;  %3265 = vmatprep.subr.bf16.mxu0 %v3264_v17 }
 0x41f   :  { %v3404_v19 = vpop.eup %3403  ;;  %3267 = vmatpush3.bf16.msra.mxu0 %v3264_v17  ;;  %v1792_v17 = vld [vmem:[#allocation3 + $0x170] sm:$0xff] }
 0x420   :  { %v3268_v20 = vpack.c.bf16 %v3402_v18, %v3404_v19 }
 0x422   :  { %3269 = vmatprep.subr.bf16.mxu0 %v3268_v20 }
 0x423   :  { %3271 = vmatpush3.bf16.msra.mxu0 %v3268_v20 }
 0x426   :  { %3025 = vmatmul.mubr.msk.f32.vlgmr.msra.gmra.mrb[48].mxu0 %vm1124_vm5, %v3889_v58 }
 0x427   :  { %3027 = vmatprep.mubr.msk.f32.mxu0 %vm1124_vm5, %v3896_v59 }
 0x42a   :  { %3028 = vmatmul.mubr.msk.f32.gmra.mrb[50].mxu0 %vm1124_vm5, %v3907_v60 }
 0x42b   :  { %3030 = vmatprep.mubr.msk.f32.mxu0 %vm1124_vm5, %v3912_v61 }
 0x42e   :  { %3031 = vmatmul.mubr.msk.f32.gmra.mrb[52].mxu0 %vm1124_vm5, %v3921_v62 }
 0x42f   :  { %3033 = vmatprep.mubr.msk.f32.mxu0 %vm1124_vm5, %v3926_v63 }
 0x432   :  { %3034 = vmatmul.mubr.msk.f32.gmra.mrb[54].mxu0 %vm1124_vm5, %v3935_v0 }
 0x433   :  { %3080 = vmatprep.mubr.msk.f32.mxu0 %vm1124_vm5, %v3880_v57  ;;  %v1661_v57 = vld [vmem:[#allocation3 + $0x120] sm:$0xff] }
 0x4f9   :  { %v3026_v22 = vpop.f32.mrb[48].mxu0 }
 0x4fa   :  { %v1771_v3 = vadd.f32 %v3026_v22, %v1658_v21  ;;  %v1731_v1 = vpop.f32.mrb[49].mxu0 }
 0x4fb   :  { %v1770_v24 = vadd.f32 %v1731_v1, %v1657_v23 }
 0x4fc   :  { %3405 = vtanh.f32 %v1771_v3 }
 0x4fd   :  { %3407 = vtanh.f32 %v1770_v24  ;;  %v3029_v26 = vpop.f32.mrb[50].mxu0 }
 0x4fe   :  { %v1773_v27 = vadd.f32 %v3029_v26, %v1660_v25  ;;  %v1741_v4 = vpop.f32.mrb[51].mxu0 }
 0x4ff   :  { %v1772_v30 = vadd.f32 %v1741_v4, %v1659_v28  ;;  %v4170_v4 = vld [vmem:[%s4261_s4 + $0x8] sm:$0xff] }
 0x500   :  { %3409 = vtanh.f32 %v1773_v27 }
 0x501   :  { %3411 = vtanh.f32 %v1772_v30  ;;  %v3032_v31 = vpop.f32.mrb[52].mxu0  ;;  %v4177_v30 = vld [vmem:[%s4261_s4 + $0x10] sm:$0xff] }
 0x502   :  { %v1775_v33 = vadd.f32 %v3032_v31, %v1662_v2  ;;  %v1751_v34 = vpop.f32.mrb[53].mxu0  ;;  %v4184_v2 = vld [vmem:[%s4261_s4 + $0x18] sm:$0xff]  ;;  %v4191_v31 = vld [vmem:[%s4261_s4 + $0x20] sm:$0xff] }
 0x503   :  { %v1774_v35 = vadd.f32 %v1751_v34, %v1661_v57  ;;  %v3483_v57 = vld [vmem:[%s4261_s4 + $0x30] sm:$0xff]  ;;  %v3484_v34 = vld [vmem:[%s4261_s4 + $0x38] sm:$0xff] }
 0x504   :  { %3413 = vtanh.f32 %v1775_v33  ;;  %v4198_v33 = vld [vmem:[%s4261_s4 + $0x28] sm:$0xff] }
 0x505   :  { %3415 = vtanh.f32 %v1774_v35  ;;  %v3035_v36 = vpop.f32.mrb[54].mxu0  ;;  %v1916_v35 = vld [vmem:[#allocation3 + $0x188] sm:$0xff] }
 0x506   :  { %v3406_v37 = vpop.eup %3405  ;;  %v1777_v13 = vadd.f32 %v3035_v36, %v1664_v16  ;;  %v1761_v39 = vpop.f32.mrb[55].mxu0 }
 0x507   :  { %v3408_v40 = vpop.eup %3407  ;;  %v1776_v41 = vadd.f32 %v1761_v39, %v1663_v38  ;;  %v1918_v39 = vld [vmem:[#allocation3 + $0x198] sm:$0xff] }
 0x508   :  { %3417 = vtanh.f32 %v1777_v13  ;;  %v3272_v42 = vpack.c.bf16 %v3406_v37, %v3408_v40  ;;  %v1915_v37 = vld [vmem:[#allocation3 + $0x180] sm:$0xff] }
 0x509   :  { %3419 = vtanh.f32 %v1776_v41 }
 0x50a   :  { %v3410_v43 = vpop.eup %3409  ;;  %3273 = vmatprep.subr.bf16.mxu1 %v3272_v42 }
 0x50b   :  { %v3412_v29 = vpop.eup %3411  ;;  %3275 = vmatpush3.bf16.msra.mxu1 %v3272_v42  ;;  %v1917_v42 = vld [vmem:[#allocation3 + $0x190] sm:$0xff] }
 0x50c   :  { %v3276_v44 = vpack.c.bf16 %v3410_v43, %v3412_v29 }
 0x50e   :  { %v3414_v45 = vpop.eup %3413  ;;  %3277 = vmatprep.subr.bf16.mxu1 %v3276_v44 }
 0x50f   :  { %v3416_v46 = vpop.eup %3415  ;;  %3279 = vmatpush3.bf16.msra.mxu1 %v3276_v44  ;;  %v1920_v44 = vld [vmem:[#allocation3 + $0x1a8] sm:$0xff] }
 0x510   :  { %v3280_v47 = vpack.c.bf16 %v3414_v45, %v3416_v46 }
 0x512   :  { %v3418_v32 = vpop.eup %3417  ;;  %3281 = vmatprep.subr.bf16.mxu1 %v3280_v47 }
 0x513   :  { %v3420_v48 = vpop.eup %3419  ;;  %3283 = vmatpush3.bf16.msra.mxu1 %v3280_v47  ;;  %v1919_v47 = vld [vmem:[#allocation3 + $0x1a0] sm:$0xff] }
 0x514   :  { %v3284_v49 = vpack.c.bf16 %v3418_v32, %v3420_v48 }
 0x516   :  { %3285 = vmatprep.subr.bf16.mxu1 %v3284_v49 }
 0x517   :  { %3287 = vmatpush3.bf16.msra.mxu1 %v3284_v49  ;;  %v1922_v49 = vld [vmem:[#allocation3 + $0x1b8] sm:$0xff] }
 0x51a   :  { %3053 = vmatmul.mubr.msk.f32.vlgmr.msra.gmra.mrb[48].mxu1 %vm1124_vm5, %v3889_v58  ;;  %v3477_v58 = vld [vmem:[%s4261_s4] sm:$0xff] }
 0x51b   :  { %3055 = vmatprep.mubr.msk.f32.mxu1 %vm1124_vm5, %v3896_v59  ;;  %v1787_v59 = vld [vmem:[#allocation3 + $0x148] sm:$0xff] }
 0x51e   :  { %3056 = vmatmul.mubr.msk.f32.gmra.mrb[50].mxu1 %vm1124_vm5, %v3907_v60 }
 0x51f   :  { %3058 = vmatprep.mubr.msk.f32.mxu1 %vm1124_vm5, %v3912_v61 }
 0x522   :  { %3059 = vmatmul.mubr.msk.f32.gmra.mrb[52].mxu1 %vm1124_vm5, %v3921_v62  ;;  %v1789_v62 = vld [vmem:[#allocation3 + $0x158] sm:$0xff] }
 0x523   :  { %3061 = vmatprep.mubr.msk.f32.mxu1 %vm1124_vm5, %v3926_v63 }
 0x526   :  { %3062 = vmatmul.mubr.msk.f32.gmra.mrb[54].mxu1 %vm1124_vm5, %v3935_v0 }
 0x527   :  { %3108 = vmatprep.mubr.msk.f32.mxu1 %vm1124_vm5, %v3477_v58 }
 0x5ed   :  { %v3054_v60 = vpop.f32.mrb[48].mxu1 }
 0x5ee   :  { %v1900_v50 = vadd.f32 %v3054_v60, %v1787_v59  ;;  %v1860_v61 = vpop.f32.mrb[49].mxu1 }
 0x5ef   :  { %v1899_v52 = vadd.f32 %v1860_v61, %v1786_v51 }
 0x5f0   :  { %3421 = vtanh.f32 %v1900_v50  ;;  %v1921_v50 = vld [vmem:[#allocation3 + $0x1b0] sm:$0xff] }
 0x5f1   :  { %3423 = vtanh.f32 %v1899_v52  ;;  %v3057_v53 = vpop.f32.mrb[50].mxu1 }
 0x5f2   :  { %v1902_v63 = vadd.f32 %v3057_v53, %v1789_v62  ;;  %v1870_v55 = vpop.f32.mrb[51].mxu1 }
 0x5f3   :  { %v1901_v0 = vadd.f32 %v1870_v55, %v1788_v54 }
 0x5f4   :  { %3425 = vtanh.f32 %v1902_v63 }
 0x5f5   :  { %3427 = vtanh.f32 %v1901_v0  ;;  %v3060_v5 = vpop.f32.mrb[52].mxu1 }
 0x5f6   :  { %v1904_v6 = vadd.f32 %v3060_v5, %v1791_v56  ;;  %v1880_v9 = vpop.f32.mrb[53].mxu1 }
 0x5f7   :  { %v1903_v10 = vadd.f32 %v1880_v9, %v1790_v7  ;;  %v3527_v9 = vmov 0.0|0.0  }
 0x5f8   :  { %3429 = vtanh.f32 %v1904_v6 }
 0x5f9   :  { %3431 = vtanh.f32 %v1903_v10  ;;  %v3063_v12 = vpop.f32.mrb[54].mxu1  ;;  %v2045_v10 = vld [vmem:[#allocation3 + $0x1c8] sm:$0xff] }
 0x5fa   :  { %v3422_v14 = vpop.eup %3421  ;;  %v1906_v15 = vadd.f32 %v3063_v12, %v1793_v11  ;;  %v1890_v18 = vpop.f32.mrb[55].mxu1 }
 0x5fb   :  { %v3424_v19 = vpop.eup %3423  ;;  %v1905_v20 = vadd.f32 %v1890_v18, %v1792_v17  ;;  %v2047_v18 = vld [vmem:[#allocation3 + $0x1d8] sm:$0xff] }
 0x5fc   :  { %3433 = vtanh.f32 %v1906_v15  ;;  %v3288_v21 = vpack.c.bf16 %v3422_v14, %v3424_v19  ;;  %v2044_v14 = vld [vmem:[#allocation3 + $0x1c0] sm:$0xff] }
 0x5fd   :  { %3435 = vtanh.f32 %v1905_v20 }
 0x5fe   :  { %v3426_v22 = vpop.eup %3425  ;;  %3289 = vmatprep.subr.bf16.mxu0 %v3288_v21 }
 0x5ff   :  { %v3428_v3 = vpop.eup %3427  ;;  %3291 = vmatpush3.bf16.msra.mxu0 %v3288_v21  ;;  %v2046_v21 = vld [vmem:[#allocation3 + $0x1d0] sm:$0xff] }
 0x600   :  { %v3292_v23 = vpack.c.bf16 %v3426_v22, %v3428_v3 }
 0x602   :  { %v3430_v1 = vpop.eup %3429  ;;  %3293 = vmatprep.subr.bf16.mxu0 %v3292_v23 }
 0x603   :  { %v3432_v24 = vpop.eup %3431  ;;  %3295 = vmatpush3.bf16.msra.mxu0 %v3292_v23  ;;  %v2049_v23 = vld [vmem:[#allocation3 + $0x1e8] sm:$0xff] }
 0x604   :  { %v3296_v25 = vpack.c.bf16 %v3430_v1, %v3432_v24 }
 0x606   :  { %v3434_v26 = vpop.eup %3433  ;;  %3297 = vmatprep.subr.bf16.mxu0 %v3296_v25 }
 0x607   :  { %v3436_v27 = vpop.eup %3435  ;;  %3299 = vmatpush3.bf16.msra.mxu0 %v3296_v25 }
 0x608   :  { %v3300_v28 = vpack.c.bf16 %v3434_v26, %v3436_v27  ;;  %v2051_v27 = vld [vmem:[#allocation3 + $0x1f8] sm:$0xff] }
 0x60a   :  { %3301 = vmatprep.subr.bf16.mxu0 %v3300_v28 }
 0x60b   :  { %3303 = vmatpush3.bf16.msra.mxu0 %v3300_v28 }
 0x60c   :  { %3320 = vmatprep.subr.bf16.mxu0 %v3527_v9 }
 0x60e   :  { %3081 = vmatmul.mubr.msk.f32.vlgmr.msra.gmra.mrb[56].mxu0 %vm1124_vm5, %v4170_v4 }
 0x60f   :  { %3083 = vmatprep.mubr.msk.f32.mxu0 %vm1124_vm5, %v4177_v30 }
 0x612   :  { %3084 = vmatmul.mubr.msk.f32.gmra.mrb[58].mxu0 %vm1124_vm5, %v4184_v2 }
 0x613   :  { %3086 = vmatprep.mubr.msk.f32.mxu0 %vm1124_vm5, %v4191_v31 }
 0x616   :  { %3087 = vmatmul.mubr.msk.f32.gmra.mrb[60].mxu0 %vm1124_vm5, %v4198_v33 }
 0x617   :  { %3089 = vmatprep.mubr.msk.f32.mxu0 %vm1124_vm5, %v3483_v57 }
 0x61a   :  { %3090 = vmatmul.mubr.msk.f32.gmra.mrb[62].mxu0 %vm1124_vm5, %v3484_v34 }
 0x61b   :  { %3136 = vmatprep.mubr.msk.f32.mxu0 %vm3528_vm6, %v3525_v8 }
 0x6e1   :  { %v3082_v16 = vpop.f32.mrb[56].mxu0 }
 0x6e2   :  { %v2029_v36 = vadd.f32 %v3082_v16, %v1916_v35  ;;  %v1989_v13 = vpop.f32.mrb[57].mxu0 }
 0x6e3   :  { %v2028_v38 = vadd.f32 %v1989_v13, %v1915_v37 }
 0x6e4   :  { %3437 = vtanh.f32 %v2029_v36 }
 0x6e5   :  { %3439 = vtanh.f32 %v2028_v38  ;;  %v3085_v40 = vpop.f32.mrb[58].mxu0 }
 0x6e6   :  { %v2031_v41 = vadd.f32 %v3085_v40, %v1918_v39  ;;  %v1999_v43 = vpop.f32.mrb[59].mxu0 }
 0x6e7   :  { %v2030_v29 = vadd.f32 %v1999_v43, %v1917_v42 }
 0x6e8   :  { %3441 = vtanh.f32 %v2031_v41 }
 0x6e9   :  { %3443 = vtanh.f32 %v2030_v29  ;;  %v3088_v45 = vpop.f32.mrb[60].mxu0 }
 0x6ea   :  { %v2033_v46 = vadd.f32 %v3088_v45, %v1920_v44  ;;  %v2009_v32 = vpop.f32.mrb[61].mxu0 }
 0x6eb   :  { %v2032_v48 = vadd.f32 %v2009_v32, %v1919_v47 }
 0x6ec   :  { %3445 = vtanh.f32 %v2033_v46 }
 0x6ed   :  { %3447 = vtanh.f32 %v2032_v48  ;;  %v3091_v58 = vpop.f32.mrb[62].mxu0  ;;  %v2186_v48 = vld [vmem:[%s4262_s5] sm:$0xff]  ;;  %s2184_s5 = sld [smem:[#allocation4]] }
 0x6ee   :  { %v3438_v59 = vpop.eup %3437  ;;  %v2035_v60 = vadd.f32 %v3091_v58, %v1922_v49  ;;  %v2019_v51 = vpop.f32.mrb[63].mxu0 }
 0x6ef   :  { %v3440_v61 = vpop.eup %3439  ;;  %v2034_v52 = vadd.f32 %v2019_v51, %v1921_v50  ;;  %v2199_v49 = vpop.permute.xlu0 %2198  ;;  %v2275_v50 = vld [vmem:[%s4264_s7] sm:$0xf]  ;;  %s3529_s7 = smov [#allocation7]  }
 0x6f0   :  { %3449 = vtanh.f32 %v2035_v60  ;;  %v3304_v62 = vpack.c.bf16 %v3438_v59, %v3440_v61  ;;  %v2280_v61 = vpop.permute.xlu1 %2279  ;;  %s2387_s19 = sshll.u32 %s3529_s7, 4  ;;  %s2388_s19 = int_to_ptr.vmem [resolvable:$true] %s2387_s19 }
 0x6f1   :  { %3451 = vtanh.f32 %v2034_v52  ;;  %s3497_s20 = scalar_lea.vmem %s2388_s19, 64  ;;  %p3502_p6 = scmp.lt.s32.totalorder %s2388_s19, %s2388_s19 }
 0x6f2   :  { %v3442_v53 = vpop.eup %3441  ;;  %3305 = vmatprep.subr.bf16.mxu1 %v3304_v62  ;;  %p3498_p5 = scmp.ne.s32.totalorder %s2388_s19, %s3497_s20  ;;  %p3503_p7 = scmp.lt.s32.totalorder %s3497_s20, %s3497_s20 }
 0x6f3   :  { %v3444_v63 = vpop.eup %3443  ;;  %3307 = vmatpush3.bf16.msra.mxu1 %v3304_v62 }
 0x6f4   :  { %v3308_v54 = vpack.c.bf16 %v3442_v53, %v3444_v63  ;;  %p3504_p8 = por %p3503_p7, %p3502_p6 }
 0x6f6   :  { %v3446_v55 = vpop.eup %3445  ;;  %3309 = vmatprep.subr.bf16.mxu1 %v3308_v54  ;;  %p3505_p9 = pnand %p3504_p8, %p3498_p5 }
 0x6f7   :  { %v3448_v0 = vpop.eup %3447  ;;  %3311 = vmatpush3.bf16.msra.mxu1 %v3308_v54 }
 0x6f8   :  { %v3312_v56 = vpack.c.bf16 %v3446_v55, %v3448_v0 }
 0x6fa   :  { %v3450_v5 = vpop.eup %3449  ;;  %3313 = vmatprep.subr.bf16.mxu1 %v3312_v56 }
 0x6fb   :  { %v3452_v6 = vpop.eup %3451  ;;  %3315 = vmatpush3.bf16.msra.mxu1 %v3312_v56 }
 0x6fc   :  { %v3316_v7 = vpack.c.bf16 %v3450_v5, %v3452_v6  ;;  %v2355_v6 = vlaneseq }
 0x6fe   :  { %3317 = vmatprep.subr.bf16.mxu1 %v3316_v7 }
 0x6ff   :  { %3319 = vmatpush3.bf16.msra.mxu1 %v3316_v7 }
 0x700   :  { %3139 = vmatprep.subr.mxu1 %v3525_v8 }
 0x702   :  { %3109 = vmatmul.mubr.msk.f32.vlgmr.msra.gmra.mrb[56].mxu1 %vm1124_vm5, %v4170_v4 }
 0x703   :  { %3111 = vmatprep.mubr.msk.f32.mxu1 %vm1124_vm5, %v4177_v30 }
 0x706   :  { %3112 = vmatmul.mubr.msk.f32.gmra.mrb[58].mxu1 %vm1124_vm5, %v4184_v2  ;;  %v2050_v2 = vld [vmem:[#allocation3 + $0x1f0] sm:$0xff] }
 0x707   :  { %3114 = vmatprep.mubr.msk.f32.mxu1 %vm1124_vm5, %v4191_v31 }
 0x70a   :  { %3115 = vmatmul.mubr.msk.f32.gmra.mrb[60].mxu1 %vm1124_vm5, %v4198_v33 }
 0x70b   :  { %3117 = vmatprep.mubr.msk.f32.mxu1 %vm1124_vm5, %v3483_v57 }
 0x70e   :  { %3118 = vmatmul.mubr.msk.f32.gmra.mrb[62].mxu1 %vm1124_vm5, %v3484_v34 }
 0x70f   :  { %3141 = vmatprep.mubr.msk.f32.mxu1 %vm3528_vm6, %v3525_v8  ;;  %v2048_v8 = vld [vmem:[#allocation3 + $0x1e0] sm:$0xff] }
 0x7d5   :  { %v3110_v11 = vpop.f32.mrb[56].mxu1 }
 0x7d6   :  { %v2158_v12 = vadd.f32 %v3110_v11, %v2045_v10  ;;  %v2118_v15 = vpop.f32.mrb[57].mxu1 }
 0x7d7   :  { %v2157_v17 = vadd.f32 %v2118_v15, %v2044_v14 }
 0x7d8   :  { %3453 = vtanh.f32 %v2158_v12  ;;  %v2356_v12 = vshrl.u32 %v2355_v6, 7 }
 0x7d9   :  { %3455 = vtanh.f32 %v2157_v17  ;;  %v3113_v19 = vpop.f32.mrb[58].mxu1  ;;  %v2360_v17 = vstv %s2546_s18 }
 0x7da   :  { %v2160_v20 = vadd.f32 %v3113_v19, %v2047_v18  ;;  %v2128_v22 = vpop.f32.mrb[59].mxu1  ;;  %vm2377_vm8 = vcmp.lt.s32.totalorder %v2356_v12, 2 }
 0x7db   :  { %v2159_v3 = vadd.f32 %v2128_v22, %v2046_v21 }
 0x7dc   :  { %3457 = vtanh.f32 %v2160_v20 }
 0x7dd   :  { %3459 = vtanh.f32 %v2159_v3  ;;  %v3116_v1 = vpop.f32.mrb[60].mxu1 }
 0x7de   :  { %v2162_v24 = vadd.f32 %v3116_v1, %v2049_v23  ;;  %v2138_v25 = vpop.f32.mrb[61].mxu1 }
 0x7df   :  { %v2161_v26 = vadd.f32 %v2138_v25, %v2048_v8 }
 0x7e0   :  { %3461 = vtanh.f32 %v2162_v24 }
 0x7e1   :  { %3463 = vtanh.f32 %v2161_v26  ;;  %v3119_v28 = vpop.f32.mrb[62].mxu1 }
 0x7e2   :  { %v3454_v4 = vpop.eup %3453  ;;  %v2164_v30 = vadd.f32 %v3119_v28, %v2051_v27  ;;  %v2148_v31 = vpop.f32.mrb[63].mxu1 }
 0x7e3   :  { %v3456_v33 = vpop.eup %3455  ;;  %2174 = vst.msk [vmem:[#allocation2 + $0x8] sm:$0xff] %vm50_vm4, %v3454_v4  ;;  %v2163_v57 = vadd.f32 %v2148_v31, %v2050_v2 }
 0x7e4   :  { %2173 = vst.msk [vmem:[#allocation2] sm:$0xff] %vm50_vm4, %v3456_v33  ;;  %3465 = vtanh.f32 %v2164_v30 }
 0x7e5   :  { %3467 = vtanh.f32 %v2163_v57 }
 0x7e6   :  { %v3458_v34 = vpop.eup %3457 }
 0x7e7   :  { %v3460_v35 = vpop.eup %3459  ;;  %2176 = vst.msk [vmem:[#allocation2 + $0x18] sm:$0xff] %vm50_vm4, %v3458_v34 }
 0x7e8   :  { %2175 = vst.msk [vmem:[#allocation2 + $0x10] sm:$0xff] %vm50_vm4, %v3460_v35 }
 0x7ea   :  { %v3462_v16 = vpop.eup %3461  ;;  %v2188_v36 = vld [vmem:[#allocation2 + $0x8] sm:$0xff] }
 0x7eb   :  { %v3464_v37 = vpop.eup %3463  ;;  %2178 = vst.msk [vmem:[#allocation2 + $0x28] sm:$0xff] %vm50_vm4, %v3462_v16  ;;  %v2187_v13 = vld [vmem:[#allocation2] sm:$0xff] }
 0x7ec   :  { %2177 = vst.msk [vmem:[#allocation2 + $0x20] sm:$0xff] %vm50_vm4, %v3464_v37  ;;  %v3321_v38 = vpack.c.bf16 %v2188_v36, %v2187_v13 }
 0x7ee   :  { %v3466_v39 = vpop.eup %3465  ;;  %3322 = vmatpush3.bf16.msra.mxu0 %v3321_v38  ;;  %v2190_v40 = vld [vmem:[#allocation2 + $0x18] sm:$0xff] }
 0x7ef   :  { %v3468_v41 = vpop.eup %3467  ;;  %2180 = vst.msk [vmem:[#allocation2 + $0x38] sm:$0xff] %vm50_vm4, %v3466_v39  ;;  %3323 = vmatprep.subr.bf16.mxu0 %v3527_v9  ;;  %v2189_v42 = vld [vmem:[#allocation2 + $0x10] sm:$0xff] }
 0x7f0   :  { %2179 = vst.msk [vmem:[#allocation2 + $0x30] sm:$0xff] %vm50_vm4, %v3468_v41  ;;  %v3324_v43 = vpack.c.bf16 %v2190_v40, %v2189_v42 }
 0x7f2   :  { %3325 = vmatpush3.bf16.msra.mxu0 %v3324_v43  ;;  %v2192_v29 = vld [vmem:[#allocation2 + $0x28] sm:$0xff] }
 0x7f3   :  { %3326 = vmatprep.subr.bf16.mxu0 %v3527_v9  ;;  %v2191_v44 = vld [vmem:[#allocation2 + $0x20] sm:$0xff] }
 0x7f4   :  { %v3327_v45 = vpack.c.bf16 %v2192_v29, %v2191_v44 }
 0x7f6   :  { %3328 = vmatpush3.bf16.msra.mxu0 %v3327_v45  ;;  %v2194_v46 = vld [vmem:[#allocation2 + $0x38] sm:$0xff] }
 0x7f7   :  { %3329 = vmatprep.subr.bf16.mxu0 %v3527_v9  ;;  %v2193_v47 = vld [vmem:[#allocation2 + $0x30] sm:$0xff]  ;;  %v2358_v9 = vstv %s2184_s5 }
 0x7f8   :  { %v3330_v32 = vpack.c.bf16 %v2194_v46, %v2193_v47 }
 0x7fa   :  { %3331 = vmatpush3.bf16.msra.mxu0 %v3330_v32 }
 0x7fd   :  { %3137 = vmatmul.mubr.msk.f32.vlgmr.msra.gmra.mrb[64].mxu0 %vm1124_vm5, %v2186_v48 }
 0x8d0   :  { %v2270_v58 = vpop.f32.mrb[64].mxu0 }
 0x8d1   :  { %v2271_v59 = vadd.f32 %v2270_v58, %v2199_v49  ;;  %v3138_v60 = vpop.f32.mrb[65].mxu0 }
 0x8d3   :  { %3469 = vtanh.f32 %v2271_v59 }
 0x8dd   :  { %v3470_v51 = vpop.eup %3469 }
 0x8de   :  { %3140 = vmatpush3.msra.mxu1 %v3470_v51 }
 0x8df   :  { %3142 = vmatmul.mubr.msk.f32.vlgmr.msra.gmra.mrb[64].mxu1 %vm50_vm4, %v2275_v50 }
 0x9b2   :  { %v2351_v52 = vpop.f32.mrb[64].mxu1 }
 0x9b3   :  { %v2352_v62 = vadd.f32 %v2351_v52, %v2280_v61  ;;  %v3143_v53 = vpop.f32.mrb[65].mxu1 }
 0x9b5   :  { %v2363_v63 = vand.u32 2147483647, %v2352_v62  ;;  %v2362_v20 = vmax.f32 %v2352_v62, 0.0 }
 0x9b7   :  { %v2364_v54 = vsub.f32 0.0, %v2363_v63 }
 0x9b9   :  { %v2365_v55 = vmul.f32 1.442695, %v2364_v54 }
 0x9bb   :  { %3471 = vpow2.f32 %v2365_v55 }
 0x9bc   :  { %3473 = vtanh.f32 %v2352_v62 }
 0x9c5   :  { %v3472_v0 = vpop.eup %3471 }
 0x9c6   :  { %v2367_v56 = vadd.f32 1.0, %v3472_v0  ;;  %v2370_v5 = vmul.f32 -0.5, %v3472_v0  ;;  %v3474_v7 = vpop.eup %3473  ;;  %v2373_v11 = vand.u32 2147483647, %v3472_v0 }
 0x9c7   :  { %v2359_v15 = vmul.f32 %v3474_v7, %v2358_v9 }
 0x9c8   :  { %3475 = vlog2.f32 %v2367_v56  ;;  %v2371_v10 = vadd.f32 1.0, %v2370_v5  ;;  %vm2374_vm7 = vcmp.lt.f32.partialorder %v2373_v11, 0.0004427343 }
 0x9c9   :  { %v2361_v22 = vsub.f32 %v2359_v15, %v2360_v17 }
 0x9ca   :  { %v2372_v19 = vmul.f32 %v3472_v0, %v2371_v10 }
 0x9d2   :  { %v3476_v14 = vpop.eup %3475 }
 0x9d3   :  { %v2369_v18 = vmul.f32 0.6931472, %v3476_v14 }
 0x9d5   :  { %v2375_v21 = vsel %vm2374_vm7, %v2372_v19, %v2369_v18 }
 0x9d6   :  { %v2376_v3 = vadd.f32 %v2375_v21, %v2362_v20 }
 0x9d8   :  { %v2378_v23 = vsel %vm2377_vm8, %v2361_v22, %v2376_v3 }
 0x9d9   :  { %2380 = vst.msk [vmem:[#allocation7] sm:$0xf] %vm2379_vm9, %v2378_v23 }
 0x9da   :  { %3508 = shalt.err (!%p3505_p9)
}
 0x9db   :  { %s3509_s22 = scalar_lea.hbm %s4266_s9, 64 }
 0x9dc   :  { %p3510_p10 = scmp.ne.s32.totalorder %s4266_s9, %s3509_s22  ;;  %p3513_p11 = scmp.lt.u32.totalorder %s3509_s22, %s4266_s9 }
 0x9de   :  { %p3515_p12 = pnand %p3513_p11, %p3510_p10 }
 0x9e0   :  { %3518 = shalt.err (!%p3515_p12)
}
 0x9e1   :  { %2390 = dma.vmem_to_hbm [thread:$0]  %s2388_s19, 64, %s4266_s9, [#allocation5]  }
 0x9e2   :  { %3521 = dma.done.wait [#allocation5], 64  }
 0x9e3   :  { %3522 = vsyncadd [#allocation5], 4294967232 }
 0x9e4   :  { %2394 = vsyncpa [#allocation5], 1 }
 0x9e5   :  { %2395 = vsyncpa [#allocation6], 1 }

</bundles_post_ra>
